<compile_context>
chip_gen: v6e
topology: v6e:2x2x1
jax: 0.10.0
libtpu: 0.0.40
codegen_flags: <defaults>
</compile_context>

<pallas_src>
import functools

import numpy as np
import jax
import jax.numpy as jnp
from jax import lax
from jax.experimental import pallas as pl
from jax.experimental.pallas import tpu as pltpu  # noqa: F401  (TPU backend assumed)


# ----------------------------------------------------------------------------
# Pallas kernels (all grid-less: one invocation, whole arrays resident in VMEM)
# ----------------------------------------------------------------------------
def _code_gate_kernel(enc_ref, cw_ref, wslab_ref, vslab_ref,
                      ct1_ref, ct2_ref, gate_ref, *, H):
    # enc/cw: (C, H)   wslab: (5H, H) = [Wg(2H); Wgo; Wcd; Wcdf]
    # vslab : (6, H)   = [bg; bgo; ln_g; ln_b; bcd; bcdf]
    f32 = jnp.float32
    enc = enc_ref[...]
    cw = cw_ref[...]
    w = wslab_ref[...]
    v = vslab_ref[...]
    wg, wgo, wcd, wcdf = w[:2 * H], w[2 * H:3 * H], w[3 * H:4 * H], w[4 * H:5 * H]
    bg, bgo, ln_g, ln_b, bcd, bcdf = (v[0:1], v[1:2], v[2:3], v[3:4], v[4:5], v[5:6])

    # code_gate_dense(concat([enc, cw], -1)) == enc @ Wg[:H] + cw @ Wg[H:]
    h = (jnp.dot(enc, wg[:H], preferred_element_type=f32)
         + jnp.dot(cw, wg[H:], preferred_element_type=f32) + bg)
    h = jnp.maximum(h, 0.0)
    gate = jax.nn.sigmoid(jnp.dot(h, wgo, preferred_element_type=f32) + bgo)

    # weight normalisation (tiny eps guards a zero row; numerically invisible)
    wn = cw * lax.rsqrt(jnp.sum(cw * cw, axis=-1, keepdims=True) + 1e-12)
    ct = enc * gate + wn

    # LayerNorm (code_LN), eps=1e-5, biased variance (matches torch)
    mu = jnp.mean(ct, axis=-1, keepdims=True)
    var = jnp.mean((ct - mu) ** 2, axis=-1, keepdims=True)
    ctn = (ct - mu) * lax.rsqrt(var + 1e-5) * ln_g + ln_b

    ct1_ref[...] = jnp.tanh(jnp.dot(ctn, wcd, preferred_element_type=f32) + bcd)
    ct2_ref[...] = jnp.tanh(jnp.dot(ctn, wcdf, preferred_element_type=f32) + bcdf)
    gate_ref[...] = gate          # reg term finished in plain JAX (tiny reduction)


def _word_level_kernel(x2_ref, wm_ref, xmax_ref, xcat_ref, sm_ref, code_ref,
                       wslab_ref, bslab_ref, wc_ref, se_ref, *, B, L, S, C, H):
    # x2: (B*L, 2H)  wm: (B*L, C)  xmax: (B*S, H)  xcat: (B*S, 2H)  sm: (B*S, C)
    # code: (C, H)   wslab: (4H, H) = [Ww(2H); Wsp(2H)]   bslab: (2, H)
    # outputs: wc (B*C, H) word clues,  se (B*S, H) span/sentence embeddings
    f32 = jnp.float32
    code = code_ref[...]
    w = wslab_ref[...]
    bvec = bslab_ref[...]
    ww, wsp = w[:2 * H], w[2 * H:]
    bw, bsp = bvec[0:1], bvec[1:2]

    # ---- word clues attention (softmax over the length axis, per batch) ----
    _x = jnp.dot(x2_ref[...], ww, preferred_element_type=f32) + bw           # (B*L, H)
    alpha = lax.dot_general(_x, code, (((1,), (1,)), ((), ())),
                            preferred_element_type=f32)                      # (B*L, C)
    alpha = jnp.where(wm_ref[...] > 0.0, alpha, -10000.0)
    for b in range(B):            # trace-time unroll; B is tiny and slices are aligned
        a = alpha[b * L:(b + 1) * L]                                         # (L, C)
        xb = _x[b * L:(b + 1) * L]                                           # (L, H)
        amax = jnp.max(a, axis=0, keepdims=True)
        e = jnp.exp(a - amax)
        p = e * pl.reciprocal(jnp.sum(e, axis=0, keepdims=True), approx=True)
        wc_ref[b * C:(b + 1) * C, :] = lax.dot_general(
            p, xb, (((0,), (0,)), ((), ())), preferred_element_type=f32)     # (C, H)

    # ---- span attention (row-wise; softmax over labels -> batch independent) ----
    xn = jnp.dot(xcat_ref[...], wsp, preferred_element_type=f32) + bsp       # (B*S, H)
    beta = lax.dot_general(xn, code, (((1,), (1,)), ((), ())),
                           preferred_element_type=f32)                       # (B*S, C)
    beta = jnp.where(sm_ref[...] > 0.0, beta, -10000.0)
    bmax = jnp.max(beta, axis=-1, keepdims=True)
    e = jnp.exp(beta - bmax)
    p = e * pl.reciprocal(jnp.sum(e, axis=-1, keepdims=True), approx=True)
    se_ref[...] = jnp.maximum(
        xmax_ref[...] + jnp.dot(p, code, preferred_element_type=f32), 0.0)


def _sent_level_kernel(x2_ref, sm_ref, wc_ref, code1_ref, code2_ref,
                       wslab_ref, bslab_ref, lb_ref, probs_ref, *, B, S, C, H):
    # x2: (B*S, 2H)  sm: (B*S, C)  wc: (B*C, H)  code1/code2: (C, H)
    # wslab: (3H, H) = [Wsd(2H); Wcl(H)]   bslab: (2, H)   lb: (1, C)
    # output: probs (B, C)  (lane-dense)
    f32 = jnp.float32
    code1 = code1_ref[...]
    code2 = code2_ref[...]
    w = wslab_ref[...]
    bvec = bslab_ref[...]
    wsd, wcl = w[:2 * H], w[2 * H:]
    bsd, bcl = bvec[0:1], bvec[1:2]
    lbias = lb_ref[...]                                                       # (1, C)

    _x = jnp.dot(x2_ref[...], wsd, preferred_element_type=f32) + bsd          # (B*S, H)
    alpha = lax.dot_general(_x, code1, (((1,), (1,)), ((), ())),
                            preferred_element_type=f32)                       # (B*S, C)
    alpha = jnp.where(sm_ref[...] > 0.0, alpha, -10000.0)

    # diagonal selector for the per-label dot product (keeps C on the lane axis)
    eye = (lax.broadcasted_iota(jnp.int32, (C, C), 0)
           == lax.broadcasted_iota(jnp.int32, (C, C), 1))

    for b in range(B):            # trace-time unroll
        a = alpha[b * S:(b + 1) * S]                                          # (S, C)
        xb = _x[b * S:(b + 1) * S]                                            # (S, H)
        amax = jnp.max(a, axis=0, keepdims=True)
        e = jnp.exp(a - amax)
        p = e * pl.reciprocal(jnp.sum(e, axis=0, keepdims=True), approx=True)
        sent_clues = lax.dot_general(p, xb, (((0,), (0,)), ((), ())),
                                     preferred_element_type=f32)              # (C, H)
        clues = jnp.maximum(wc_ref[b * C:(b + 1) * C, :], sent_clues)
        clues = jnp.maximum(
            jnp.dot(clues, wcl, preferred_element_type=f32) + bcl, 0.0)       # (C, H)
        # logits[c] = <clues[c,:], code2[c,:]> = diag(clues @ code2^T), as a (1,C) row
        m = lax.dot_general(clues, code2, (((1,), (1,)), ((), ())),
                            preferred_element_type=f32)                       # (C, C)
        logits = jnp.sum(jnp.where(eye, m, 0.0), axis=0, keepdims=True) + lbias
        probs_ref[b:b + 1, :] = jax.nn.sigmoid(logits)


# ----------------------------------------------------------------------------
# Pallas wrappers (no grid: whole problem fits one invocation at these shapes)
# ----------------------------------------------------------------------------
def code_gate_pallas(enc, cw, params):
    C, H = cw.shape
    wslab = jnp.concatenate([params["code_gate_W"], params["code_gate_out_W"],
                             params["code_dense_W"], params["code_dense_final_W"]],
                            axis=0)                                           # (5H, H)
    vslab = jnp.stack([params["code_gate_b"], params["code_gate_out_b"],
                       params["code_LN_g"], params["code_LN_b"],
                       params["code_dense_b"], params["code_dense_final_b"]],
                      axis=0)                                                 # (6, H)
    return pl.pallas_call(
        functools.partial(_code_gate_kernel, H=H),
        out_shape=(jax.ShapeDtypeStruct((C, H), jnp.float32),   # code_text (code_dense)
                   jax.ShapeDtypeStruct((C, H), jnp.float32),   # code_text (code_dense_final)
                   jax.ShapeDtypeStruct((C, H), jnp.float32)),  # gate (for reg)
    )(enc, cw, wslab, vslab)


def word_level_pallas(x2w, word_masks, x_max, x_cat, sent_masks,
                      w_word, b_word, w_span, b_span, code1):
    B, L, H2 = x2w.shape
    H = H2 // 2
    C = code1.shape[0]
    S = x_max.shape[1]
    wslab = jnp.concatenate([w_word, w_span], axis=0)                         # (4H, H)
    bslab = jnp.stack([b_word, b_span], axis=0)                               # (2, H)
    wmask_bc = jnp.broadcast_to(word_masks.reshape(B * L, 1), (B * L, C))
    smask_bc = jnp.broadcast_to(sent_masks.reshape(B * S, 1), (B * S, C))
    wc_flat, se_flat = pl.pallas_call(
        functools.partial(_word_level_kernel, B=B, L=L, S=S, C=C, H=H),
        out_shape=(jax.ShapeDtypeStruct((B * C, H), jnp.float32),
                   jax.ShapeDtypeStruct((B * S, H), jnp.float32)),
    )(x2w.reshape(B * L, H2), wmask_bc, x_max.reshape(B * S, H),
      x_cat.reshape(B * S, H2), smask_bc, code1, wslab, bslab)
    return wc_flat, se_flat.reshape(B, S, H)


def sent_level_pallas(x2s, sent_masks, wc_flat, code1, code2,
                      w_sent, b_sent, w_clues, b_clues, logits_bias):
    B, S, H2 = x2s.shape
    H = H2 // 2
    C = code1.shape[0]
    wslab = jnp.concatenate([w_sent, w_clues], axis=0)                        # (3H, H)
    bslab = jnp.stack([b_sent, b_clues], axis=0)                              # (2, H)
    smask_bc = jnp.broadcast_to(sent_masks.reshape(B * S, 1), (B * S, C))
    return pl.pallas_call(
        functools.partial(_sent_level_kernel, B=B, S=S, C=C, H=H),
        out_shape=jax.ShapeDtypeStruct((B, C), jnp.float32),
    )(x2s.reshape(B * S, H2), smask_bc, wc_flat, code1, code2,
      wslab, bslab, logits_bias.reshape(1, C))


# ----------------------------------------------------------------------------
# Bidirectional GRU encoder (plain JAX glue — sequential recurrence).
# fwd/bwd directions batched into one lax.scan; input-side gate matmuls hoisted
# out of the recurrence (one big matmul instead of T small ones).
# ----------------------------------------------------------------------------
def init_gru_dir(key, in_dim, hid):
    k1, k2 = jax.random.split(key)
    s = 1.0 / np.sqrt(hid)
    Wi = jax.random.uniform(k1, (in_dim, 3 * hid), jnp.float32, -s, s)
    Wh = jax.random.uniform(k2, (hid, 3 * hid), jnp.float32, -s, s)
    bi = jnp.zeros((3 * hid,), jnp.float32)
    bh = jnp.zeros((3 * hid,), jnp.float32)
    return (Wi, Wh, bi, bh)


def bigru(pf, pb, x, mask, hid):
    """Bidirectional GRU; returns (concat(fwd, bwd) sequence, h_fwd, h_bwd)."""
    Wi = jnp.stack([pf[0], pb[0]])            # (2, E, 3H)
    Wh = jnp.stack([pf[1], pb[1]])            # (2, H, 3H)
    bi = jnp.stack([pf[2], pb[2]])            # (2, 3H)
    bh = jnp.stack([pf[3], pb[3]])            # (2, 3H)
    B = x.shape[0]
    x_d = jnp.stack([x, x[:, ::-1]])          # (2, B, T, E)
    m_d = jnp.stack([mask, mask[:, ::-1]])    # (2, B, T)
    gi_all = jnp.einsum('dbte,deg->dbtg', x_d, Wi) + bi[:, None, None, :]

    def step(h, inp):
        gi, mt = inp                          # (2, B, 3H), (2, B)
        gh = jnp.einsum('dbh,dhg->dbg', h, Wh) + bh[:, None, :]
        ir, iz, inn = jnp.split(gi, 3, axis=-1)
        hr, hz, hn = jnp.split(gh, 3, axis=-1)
        r = jax.nn.sigmoid(ir + hr)
        z = jax.nn.sigmoid(iz + hz)
        n = jnp.tanh(inn + r * hn)
        h_new = (1.0 - z) * n + z * h
        mte = mt[..., None]
        h_new = mte * h_new + (1.0 - mte) * h
        return h_new, mte * h_new             # padded positions output 0

    h0 = jnp.zeros((2, B, hid), jnp.float32)
    hT, outs = jax.lax.scan(step, h0,
                            (jnp.moveaxis(gi_all, 2, 0), jnp.moveaxis(m_d, 2, 0)))
    outs = jnp.moveaxis(outs, 0, 2)           # (2, B, T, H)
    out_f = outs[0]
    out_b = outs[1][:, ::-1]
    return jnp.concatenate([out_f, out_b], axis=-1), hT[0], hT[1]


# ----------------------------------------------------------------------------
# Parameter init helper (deterministic, synthetic — no checkpoint loading)
# ----------------------------------------------------------------------------
def xavier(key, fan_in, fan_out):
    limit = np.sqrt(6.0 / (fan_in + fan_out))
    return jax.random.uniform(key, (fan_in, fan_out), jnp.float32, -limit, limit)


# ----------------------------------------------------------------------------
# Full forward pass
# ----------------------------------------------------------------------------
def discnet_re_forward(params, text, segments, sen_start_pos, sen_end_pos,
                       sen_spans, code_desc_text, labels, code_fq, H):
    f32 = jnp.float32
    B, L = text.shape
    word_masks = (text > 0).astype(f32)                      # [B, L]
    code_masks = (code_desc_text > 0).astype(f32)            # [C, Lc]

    # embeddings (seg_dropout p=0.6 is identity in eval mode)
    word_embed = params["word_emb"][text]                    # [B, L, E]
    seg_embed = params["head_emb"][segments]                 # [B, L, E]
    seg_embed = seg_embed / (jnp.linalg.norm(seg_embed, axis=-1, keepdims=True) + 1e-12)
    word_embed = (seg_embed + word_embed) * word_masks[..., None]
    code_embed = params["code_emb"][code_desc_text]          # [C, Lc, E]

    # code encoder (return_sequence=False -> sum of final fwd/bwd states, [C, H])
    _, h_cf, h_cb = bigru(params["code_gru_f"], params["code_gru_b"],
                          code_embed, code_masks, H)
    code_enc = h_cf + h_cb

    # Pallas kernel 1: code gating + weight norm + LayerNorm + code_dense(_final)
    code_text1, code_text2, gate = code_gate_pallas(code_enc, params["code_weights"],
                                                    params)
    reg = -jnp.mean(gate * gate * code_fq[:, None])          # tiny reduction, plain JAX

    # ------------- word level BiGRU -------------------------------------------
    x2w, _, _ = bigru(params["word_gru_f"], params["word_gru_b"],
                      word_embed, word_masks, H)              # [B, L, 2H]

    # span glue (static spans; pad span axis to a multiple of 8 for aligned tiles;
    # padded rows are fully masked downstream -> no semantic change)
    S_real = max(len(s) for s in sen_spans)
    S = int(np.ceil(max(S_real, 1) / 8.0) * 8)
    x_fwd, x_bwd = x2w[:, :, :H], x2w[:, :, H:]
    x_max_rows, xcat_rows, mask_rows = [], [], []
    for i in range(B):
        spans = sen_spans[i]
        offs = np.cumsum([0] + list(spans))
        segs = [jnp.max(word_embed[i, offs[j]:offs[j + 1]], axis=0)
                for j in range(len(spans))]
        xm = jnp.stack(segs)                                  # [n_i, E==H]
        nf = x_fwd[i, np.asarray(sen_end_pos[i])]
        nb = x_bwd[i, np.asarray(sen_start_pos[i])]
        xc = jnp.concatenate([nf, nb], axis=-1)               # [n_i, 2H]
        pad = S - len(spans)
        xm = jnp.concatenate([xm, jnp.zeros((pad, xm.shape[1]), f32)], 0)
        xc = jnp.concatenate([xc, jnp.zeros((pad, xc.shape[1]), f32)], 0)
        x_max_rows.append(xm)
        xcat_rows.append(xc)
        mask_rows.append(jnp.concatenate(
            [jnp.ones((len(spans),), f32), jnp.zeros((pad,), f32)]))
    x_max = jnp.stack(x_max_rows)                             # [B, S, H]
    x_cat = jnp.stack(xcat_rows)                              # [B, S, 2H]
    sent_masks = jnp.stack(mask_rows)                         # [B, S]

    # Pallas kernel 2: word clues attention + span attention (fused)
    wc_flat, sent_embed = word_level_pallas(
        x2w, word_masks, x_max, x_cat, sent_masks,
        params["word_dense_W"], params["word_dense_b"],
        params["sent_span_dense_W"], params["sent_span_dense_b"], code_text1)

    # ------------- sentence level BiGRU ---------------------------------------
    x2s, _, _ = bigru(params["sent_gru_f"], params["sent_gru_b"],
                      sent_embed, sent_masks, H)              # [B, S, 2H]

    # Pallas kernel 3: sentence clues + clues max/dense + per-label logits
    probs = sent_level_pallas(
        x2s, sent_masks, wc_flat, code_text1, code_text2,
        params["sent_dense_W"], params["sent_dense_b"],
        params["clues_dense_W"], params["clues_dense_b"],
        params["logits_bias"])                                # [B, C]

    labels = labels.astype(f32)
    p = jnp.clip(probs, 1e-7, 1.0 - 1e-7)
    loss = -jnp.mean(labels * jnp.log(p) + (1.0 - labels) * jnp.log(1.0 - p))
    return probs, loss, reg


# ----------------------------------------------------------------------------
# Main
# ----------------------------------------------------------------------------
if __name__ == "__main__":
    key = jax.random.PRNGKey(0)
    B, L, Lc = 2, 16, 8          # batch, words per doc, code description length
    H = 32                       # hidden_dim
    E = 32                       # embedding dim (original hard-codes 100; E==H here)
    C = 8                        # num_labels
    VOCAB, HEADS = 50, 101

    ks = list(jax.random.split(key, 40))
    params = {
        "word_emb": 0.1 * jax.random.normal(ks[0], (VOCAB, E), jnp.float32),
        "code_emb": 0.1 * jax.random.normal(ks[1], (VOCAB, E), jnp.float32),
        "head_emb": 0.1 * jax.random.normal(ks[2], (HEADS, E), jnp.float32) + 0.05,
        "word_dense_W": xavier(ks[3], 2 * H, H), "word_dense_b": jnp.zeros((H,)),
        "sent_dense_W": xavier(ks[4], 2 * H, H), "sent_dense_b": jnp.zeros((H,)),
        "sent_span_dense_W": xavier(ks[5], 2 * H, H), "sent_span_dense_b": jnp.zeros((H,)),
        "code_weights": xavier(ks[6], C, H),
        "code_dense_W": xavier(ks[7], H, H), "code_dense_b": jnp.zeros((H,)),
        "code_dense_final_W": xavier(ks[8], H, H), "code_dense_final_b": jnp.zeros((H,)),
        "code_gate_W": xavier(ks[9], 2 * H, H), "code_gate_b": jnp.zeros((H,)),
        "code_gate_out_W": xavier(ks[10], H, H), "code_gate_out_b": jnp.zeros((H,)),
        "clues_dense_W": xavier(ks[11], H, H), "clues_dense_b": jnp.zeros((H,)),
        "logits_bias": jnp.zeros((C,)),
        "code_LN_g": jnp.ones((H,)), "code_LN_b": jnp.zeros((H,)),
        "code_gru_f": init_gru_dir(ks[12], E, H), "code_gru_b": init_gru_dir(ks[13], E, H),
        "word_gru_f": init_gru_dir(ks[14], E, H), "word_gru_b": init_gru_dir(ks[15], E, H),
        "sent_gru_f": init_gru_dir(ks[16], H, H), "sent_gru_b": init_gru_dir(ks[17], H, H),
    }

    # deterministic inputs
    text = jax.random.randint(ks[20], (B, L), 1, VOCAB)
    text = text.at[1, -3:].set(0)                             # some padding in batch 1
    segments = jax.random.randint(ks[21], (B, L), 0, HEADS)
    code_desc_text = jax.random.randint(ks[22], (C, Lc), 1, VOCAB)
    code_desc_text = code_desc_text.at[:, -1].set(0)
    labels = (jax.random.uniform(ks[23], (B, C)) > 0.5).astype(jnp.int32)
    code_fq = jax.random.uniform(ks[24], (C,), jnp.float32, 0.1, 1.0)

    # static span structure (sum of spans == L per batch element)
    sen_spans = [[4, 4, 4, 4], [8, 8]]
    sen_start_pos = [[0, 4, 8, 12], [0, 8]]
    sen_end_pos = [[3, 7, 11, 15], [7, 15]]

    @jax.jit
    def run(params, text, segments, code_desc_text, labels, code_fq):
        return discnet_re_forward(params, text, segments, sen_start_pos,
                                  sen_end_pos, sen_spans, code_desc_text,
                                  labels, code_fq, H)

    probs, loss, reg = run(params, text, segments, code_desc_text, labels, code_fq)

    jax.block_until_ready((probs, loss, reg))
    assert probs.shape == (B, C)
    assert np.isfinite(np.asarray(probs)).all()
    assert np.isfinite(float(loss)) and np.isfinite(float(reg))
    print("KERNEL_OK")
</pallas_src>

<mosaic_0001>
module attributes {stable_mosaic.version = 11 : i64} {
  func.func @_code_gate_kernel(%arg0: memref<8x32xf32, #tpu.memory_space<vmem>>, %arg1: memref<8x32xf32, #tpu.memory_space<vmem>>, %arg2: memref<160x32xf32, #tpu.memory_space<vmem>>, %arg3: memref<6x32xf32, #tpu.memory_space<vmem>>, %arg4: memref<8x32xf32, #tpu.memory_space<vmem>>, %arg5: memref<8x32xf32, #tpu.memory_space<vmem>>, %arg6: memref<8x32xf32, #tpu.memory_space<vmem>>) attributes {dimension_semantics = [], scalar_prefetch = 0 : i64, scratch_operands = 0 : i64, tpu.core_type = #tpu.core_type<tc>} {
    %c0 = arith.constant 0 : index
    %c0_0 = arith.constant 0 : index
    %0 = vector.load %arg0[%c0, %c0_0] : memref<8x32xf32, #tpu.memory_space<vmem>>, vector<8x32xf32>
    %c0_1 = arith.constant 0 : index
    %c0_2 = arith.constant 0 : index
    %1 = vector.load %arg1[%c0_1, %c0_2] : memref<8x32xf32, #tpu.memory_space<vmem>>, vector<8x32xf32>
    %c0_3 = arith.constant 0 : index
    %c0_4 = arith.constant 0 : index
    %2 = vector.load %arg2[%c0_3, %c0_4] : memref<160x32xf32, #tpu.memory_space<vmem>>, vector<160x32xf32>
    %c0_5 = arith.constant 0 : index
    %c0_6 = arith.constant 0 : index
    %3 = vector.load %arg3[%c0_5, %c0_6] : memref<6x32xf32, #tpu.memory_space<vmem>>, vector<6x32xf32>
    %4 = vector.extract_strided_slice %2 {offsets = [0, 0], sizes = [64, 32], strides = [1, 1]} : vector<160x32xf32> to vector<64x32xf32>
    %5 = vector.extract_strided_slice %2 {offsets = [64, 0], sizes = [32, 32], strides = [1, 1]} : vector<160x32xf32> to vector<32x32xf32>
    %6 = vector.extract_strided_slice %2 {offsets = [96, 0], sizes = [32, 32], strides = [1, 1]} : vector<160x32xf32> to vector<32x32xf32>
    %7 = vector.extract_strided_slice %2 {offsets = [128, 0], sizes = [32, 32], strides = [1, 1]} : vector<160x32xf32> to vector<32x32xf32>
    %8 = vector.extract_strided_slice %3 {offsets = [0, 0], sizes = [1, 32], strides = [1, 1]} : vector<6x32xf32> to vector<1x32xf32>
    %9 = vector.extract_strided_slice %3 {offsets = [1, 0], sizes = [1, 32], strides = [1, 1]} : vector<6x32xf32> to vector<1x32xf32>
    %10 = vector.extract_strided_slice %3 {offsets = [2, 0], sizes = [1, 32], strides = [1, 1]} : vector<6x32xf32> to vector<1x32xf32>
    %11 = vector.extract_strided_slice %3 {offsets = [3, 0], sizes = [1, 32], strides = [1, 1]} : vector<6x32xf32> to vector<1x32xf32>
    %12 = vector.extract_strided_slice %3 {offsets = [4, 0], sizes = [1, 32], strides = [1, 1]} : vector<6x32xf32> to vector<1x32xf32>
    %13 = vector.extract_strided_slice %3 {offsets = [5, 0], sizes = [1, 32], strides = [1, 1]} : vector<6x32xf32> to vector<1x32xf32>
    %14 = vector.extract_strided_slice %4 {offsets = [0, 0], sizes = [32, 32], strides = [1, 1]} : vector<64x32xf32> to vector<32x32xf32>
    %cst = arith.constant dense<0.000000e+00> : vector<8x32xf32>
    %15 = tpu.matmul %0, %14, %cst {dimension_numbers = #tpu.dot_dimension_numbers<[1], [0], [0], [1], [0, 0, 1, 1], [], []>} : vector<8x32xf32>, vector<32x32xf32>, vector<8x32xf32> -> vector<8x32xf32>
    %16 = vector.extract_strided_slice %4 {offsets = [32, 0], sizes = [32, 32], strides = [1, 1]} : vector<64x32xf32> to vector<32x32xf32>
    %cst_7 = arith.constant dense<0.000000e+00> : vector<8x32xf32>
    %17 = tpu.matmul %1, %16, %cst_7 {dimension_numbers = #tpu.dot_dimension_numbers<[1], [0], [0], [1], [0, 0, 1, 1], [], []>} : vector<8x32xf32>, vector<32x32xf32>, vector<8x32xf32> -> vector<8x32xf32>
    %18 = arith.addf %15, %17 : vector<8x32xf32>
    %19 = vector.broadcast %8 : vector<1x32xf32> to vector<8x32xf32>
    %20 = arith.addf %18, %19 : vector<8x32xf32>
    %cst_8 = arith.constant 0.000000e+00 : f32
    %21 = vector.broadcast %cst_8 : f32 to vector<8x32xf32>
    %22 = arith.maximumf %20, %21 : vector<8x32xf32>
    %cst_9 = arith.constant dense<0.000000e+00> : vector<8x32xf32>
    %23 = tpu.matmul %22, %5, %cst_9 {dimension_numbers = #tpu.dot_dimension_numbers<[1], [0], [0], [1], [0, 0, 1, 1], [], []>} : vector<8x32xf32>, vector<32x32xf32>, vector<8x32xf32> -> vector<8x32xf32>
    %24 = vector.broadcast %9 : vector<1x32xf32> to vector<8x32xf32>
    %25 = arith.addf %23, %24 : vector<8x32xf32>
    %26 = arith.negf %25 : vector<8x32xf32>
    %27 = math.exp %26 : vector<8x32xf32>
    %cst_10 = arith.constant 1.000000e+00 : f32
    %28 = vector.broadcast %cst_10 : f32 to vector<8x32xf32>
    %29 = arith.addf %28, %27 : vector<8x32xf32>
    %30 = arith.divf %28, %29 : vector<8x32xf32>
    %31 = arith.mulf %1, %1 : vector<8x32xf32>
    %cst_11 = arith.constant dense<0.000000e+00> : vector<8xf32>
    %32 = vector.multi_reduction <add>, %31, %cst_11 [1] : vector<8x32xf32> to vector<8xf32>
    %33 = vector.shape_cast %32 : vector<8xf32> to vector<8x1xf32>
    %cst_12 = arith.constant 9.99999996E-13 : f32
    %34 = vector.broadcast %cst_12 : f32 to vector<8x1xf32>
    %35 = arith.addf %33, %34 : vector<8x1xf32>
    %36 = math.rsqrt %35 : vector<8x1xf32>
    %37 = vector.broadcast %36 : vector<8x1xf32> to vector<8x32xf32>
    %38 = arith.mulf %1, %37 : vector<8x32xf32>
    %39 = arith.mulf %0, %30 : vector<8x32xf32>
    %40 = arith.addf %39, %38 : vector<8x32xf32>
    %cst_13 = arith.constant dense<0.000000e+00> : vector<8xf32>
    %41 = vector.multi_reduction <add>, %40, %cst_13 [1] : vector<8x32xf32> to vector<8xf32>
    %42 = vector.shape_cast %41 : vector<8xf32> to vector<8x1xf32>
    %cst_14 = arith.constant 3.200000e+01 : f32
    %43 = vector.broadcast %cst_14 : f32 to vector<8x1xf32>
    %44 = arith.divf %42, %43 : vector<8x1xf32>
    %45 = vector.broadcast %44 : vector<8x1xf32> to vector<8x32xf32>
    %46 = arith.subf %40, %45 : vector<8x32xf32>
    %47 = arith.mulf %46, %46 : vector<8x32xf32>
    %cst_15 = arith.constant dense<0.000000e+00> : vector<8xf32>
    %48 = vector.multi_reduction <add>, %47, %cst_15 [1] : vector<8x32xf32> to vector<8xf32>
    %49 = vector.shape_cast %48 : vector<8xf32> to vector<8x1xf32>
    %cst_16 = arith.constant 3.200000e+01 : f32
    %50 = vector.broadcast %cst_16 : f32 to vector<8x1xf32>
    %51 = arith.divf %49, %50 : vector<8x1xf32>
    %52 = vector.broadcast %44 : vector<8x1xf32> to vector<8x32xf32>
    %53 = arith.subf %40, %52 : vector<8x32xf32>
    %cst_17 = arith.constant 9.99999974E-6 : f32
    %54 = vector.broadcast %cst_17 : f32 to vector<8x1xf32>
    %55 = arith.addf %51, %54 : vector<8x1xf32>
    %56 = math.rsqrt %55 : vector<8x1xf32>
    %57 = vector.broadcast %56 : vector<8x1xf32> to vector<8x32xf32>
    %58 = arith.mulf %53, %57 : vector<8x32xf32>
    %59 = vector.broadcast %10 : vector<1x32xf32> to vector<8x32xf32>
    %60 = arith.mulf %58, %59 : vector<8x32xf32>
    %61 = vector.broadcast %11 : vector<1x32xf32> to vector<8x32xf32>
    %62 = arith.addf %60, %61 : vector<8x32xf32>
    %cst_18 = arith.constant dense<0.000000e+00> : vector<8x32xf32>
    %63 = tpu.matmul %62, %6, %cst_18 {dimension_numbers = #tpu.dot_dimension_numbers<[1], [0], [0], [1], [0, 0, 1, 1], [], []>} : vector<8x32xf32>, vector<32x32xf32>, vector<8x32xf32> -> vector<8x32xf32>
    %64 = vector.broadcast %12 : vector<1x32xf32> to vector<8x32xf32>
    %65 = arith.addf %63, %64 : vector<8x32xf32>
    %66 = math.tanh %65 : vector<8x32xf32>
    %c0_19 = arith.constant 0 : index
    %c0_20 = arith.constant 0 : index
    %67 = vector.load %arg4[%c0_19, %c0_20] : memref<8x32xf32, #tpu.memory_space<vmem>>, vector<8x32xf32>
    tpu.vector_store %arg4[%c0_19, %c0_20], %66 {strides = array<i32>} : memref<8x32xf32, #tpu.memory_space<vmem>>, vector<8x32xf32>,
    %cst_21 = arith.constant dense<0.000000e+00> : vector<8x32xf32>
    %68 = tpu.matmul %62, %7, %cst_21 {dimension_numbers = #tpu.dot_dimension_numbers<[1], [0], [0], [1], [0, 0, 1, 1], [], []>} : vector<8x32xf32>, vector<32x32xf32>, vector<8x32xf32> -> vector<8x32xf32>
    %69 = vector.broadcast %13 : vector<1x32xf32> to vector<8x32xf32>
    %70 = arith.addf %68, %69 : vector<8x32xf32>
    %71 = math.tanh %70 : vector<8x32xf32>
    %c0_22 = arith.constant 0 : index
    %c0_23 = arith.constant 0 : index
    %72 = vector.load %arg5[%c0_22, %c0_23] : memref<8x32xf32, #tpu.memory_space<vmem>>, vector<8x32xf32>
    tpu.vector_store %arg5[%c0_22, %c0_23], %71 {strides = array<i32>} : memref<8x32xf32, #tpu.memory_space<vmem>>, vector<8x32xf32>,
    %c0_24 = arith.constant 0 : index
    %c0_25 = arith.constant 0 : index
    %73 = vector.load %arg6[%c0_24, %c0_25] : memref<8x32xf32, #tpu.memory_space<vmem>>, vector<8x32xf32>
    tpu.vector_store %arg6[%c0_24, %c0_25], %30 {strides = array<i32>} : memref<8x32xf32, #tpu.memory_space<vmem>>, vector<8x32xf32>,
    return
  }
}

module attributes {stable_mosaic.version = 11 : i64} {
  func.func @_word_level_kernel(%arg0: memref<32x64xf32, #tpu.memory_space<vmem>>, %arg1: memref<32x8xf32, #tpu.memory_space<vmem>>, %arg2: memref<16x32xf32, #tpu.memory_space<vmem>>, %arg3: memref<16x64xf32, #tpu.memory_space<vmem>>, %arg4: memref<16x8xf32, #tpu.memory_space<vmem>>, %arg5: memref<8x32xf32, #tpu.memory_space<vmem>>, %arg6: memref<128x32xf32, #tpu.memory_space<vmem>>, %arg7: memref<2x32xf32, #tpu.memory_space<vmem>>, %arg8: memref<16x32xf32, #tpu.memory_space<vmem>>, %arg9: memref<16x32xf32, #tpu.memory_space<vmem>>) attributes {dimension_semantics = [], scalar_prefetch = 0 : i64, scratch_operands = 0 : i64, tpu.core_type = #tpu.core_type<tc>} {
    %c0 = arith.constant 0 : index
    %c0_0 = arith.constant 0 : index
    %0 = vector.load %arg5[%c0, %c0_0] : memref<8x32xf32, #tpu.memory_space<vmem>>, vector<8x32xf32>
    %c0_1 = arith.constant 0 : index
    %c0_2 = arith.constant 0 : index
    %1 = vector.load %arg6[%c0_1, %c0_2] : memref<128x32xf32, #tpu.memory_space<vmem>>, vector<128x32xf32>
    %c0_3 = arith.constant 0 : index
    %c0_4 = arith.constant 0 : index
    %2 = vector.load %arg7[%c0_3, %c0_4] : memref<2x32xf32, #tpu.memory_space<vmem>>, vector<2x32xf32>
    %3 = vector.extract_strided_slice %1 {offsets = [0, 0], sizes = [64, 32], strides = [1, 1]} : vector<128x32xf32> to vector<64x32xf32>
    %4 = vector.extract_strided_slice %1 {offsets = [64, 0], sizes = [64, 32], strides = [1, 1]} : vector<128x32xf32> to vector<64x32xf32>
    %5 = vector.extract_strided_slice %2 {offsets = [0, 0], sizes = [1, 32], strides = [1, 1]} : vector<2x32xf32> to vector<1x32xf32>
    %6 = vector.extract_strided_slice %2 {offsets = [1, 0], sizes = [1, 32], strides = [1, 1]} : vector<2x32xf32> to vector<1x32xf32>
    %c0_5 = arith.constant 0 : index
    %c0_6 = arith.constant 0 : index
    %7 = vector.load %arg0[%c0_5, %c0_6] : memref<32x64xf32, #tpu.memory_space<vmem>>, vector<32x64xf32>
    %cst = arith.constant dense<0.000000e+00> : vector<32x32xf32>
    %8 = tpu.matmul %7, %3, %cst {dimension_numbers = #tpu.dot_dimension_numbers<[1], [0], [0], [1], [0, 0, 1, 1], [], []>} : vector<32x64xf32>, vector<64x32xf32>, vector<32x32xf32> -> vector<32x32xf32>
    %9 = vector.broadcast %5 : vector<1x32xf32> to vector<32x32xf32>
    %10 = arith.addf %8, %9 : vector<32x32xf32>
    %cst_7 = arith.constant dense<0.000000e+00> : vector<32x8xf32>
    %11 = tpu.matmul %10, %0, %cst_7 {dimension_numbers = #tpu.dot_dimension_numbers<[1], [1], [0], [0], [0, 0, 1, 0], [], []>} : vector<32x32xf32>, vector<8x32xf32>, vector<32x8xf32> -> vector<32x8xf32>
    %c0_8 = arith.constant 0 : index
    %c0_9 = arith.constant 0 : index
    %12 = vector.load %arg1[%c0_8, %c0_9] : memref<32x8xf32, #tpu.memory_space<vmem>>, vector<32x8xf32>
    %cst_10 = arith.constant 0.000000e+00 : f32
    %13 = vector.broadcast %cst_10 : f32 to vector<32x8xf32>
    %14 = arith.cmpf ogt, %12, %13 : vector<32x8xf32>
    %cst_11 = arith.constant -1.000000e+04 : f32
    %15 = vector.broadcast %cst_11 : f32 to vector<32x8xf32>
    %16 = arith.select %14, %11, %15 : vector<32x8xi1>, vector<32x8xf32>
    %17 = vector.extract_strided_slice %16 {offsets = [0, 0], sizes = [16, 8], strides = [1, 1]} : vector<32x8xf32> to vector<16x8xf32>
    %18 = vector.extract_strided_slice %10 {offsets = [0, 0], sizes = [16, 32], strides = [1, 1]} : vector<32x32xf32> to vector<16x32xf32>
    %cst_12 = arith.constant dense<0xFF800000> : vector<8xf32>
    %19 = vector.multi_reduction <maximumf>, %17, %cst_12 [0] : vector<16x8xf32> to vector<8xf32>
    %20 = vector.shape_cast %19 : vector<8xf32> to vector<1x8xf32>
    %21 = vector.broadcast %20 : vector<1x8xf32> to vector<16x8xf32>
    %22 = arith.subf %17, %21 : vector<16x8xf32>
    %23 = math.exp %22 : vector<16x8xf32>
    %cst_13 = arith.constant dense<0.000000e+00> : vector<8xf32>
    %24 = vector.multi_reduction <add>, %23, %cst_13 [0] : vector<16x8xf32> to vector<8xf32>
    %25 = vector.shape_cast %24 : vector<8xf32> to vector<1x8xf32>
    %26 = tpu.reciprocal %25 {approx = true} : vector<1x8xf32> -> vector<1x8xf32>
    %27 = vector.broadcast %26 : vector<1x8xf32> to vector<16x8xf32>
    %28 = arith.mulf %23, %27 : vector<16x8xf32>
    %cst_14 = arith.constant dense<0.000000e+00> : vector<8x32xf32>
    %29 = tpu.matmul %28, %18, %cst_14 {dimension_numbers = #tpu.dot_dimension_numbers<[0], [0], [1], [1], [0, 1, 1, 1], [], []>} : vector<16x8xf32>, vector<16x32xf32>, vector<8x32xf32> -> vector<8x32xf32>
    %c0_15 = arith.constant 0 : index
    %c0_16 = arith.constant 0 : index
    %30 = vector.load %arg8[%c0_15, %c0_16] : memref<16x32xf32, #tpu.memory_space<vmem>>, vector<8x32xf32>
    tpu.vector_store %arg8[%c0_15, %c0_16], %29 {strides = array<i32>} : memref<16x32xf32, #tpu.memory_space<vmem>>, vector<8x32xf32>,
    %31 = vector.extract_strided_slice %16 {offsets = [16, 0], sizes = [16, 8], strides = [1, 1]} : vector<32x8xf32> to vector<16x8xf32>
    %32 = vector.extract_strided_slice %10 {offsets = [16, 0], sizes = [16, 32], strides = [1, 1]} : vector<32x32xf32> to vector<16x32xf32>
    %cst_17 = arith.constant dense<0xFF800000> : vector<8xf32>
    %33 = vector.multi_reduction <maximumf>, %31, %cst_17 [0] : vector<16x8xf32> to vector<8xf32>
    %34 = vector.shape_cast %33 : vector<8xf32> to vector<1x8xf32>
    %35 = vector.broadcast %34 : vector<1x8xf32> to vector<16x8xf32>
    %36 = arith.subf %31, %35 : vector<16x8xf32>
    %37 = math.exp %36 : vector<16x8xf32>
    %cst_18 = arith.constant dense<0.000000e+00> : vector<8xf32>
    %38 = vector.multi_reduction <add>, %37, %cst_18 [0] : vector<16x8xf32> to vector<8xf32>
    %39 = vector.shape_cast %38 : vector<8xf32> to vector<1x8xf32>
    %40 = tpu.reciprocal %39 {approx = true} : vector<1x8xf32> -> vector<1x8xf32>
    %41 = vector.broadcast %40 : vector<1x8xf32> to vector<16x8xf32>
    %42 = arith.mulf %37, %41 : vector<16x8xf32>
    %cst_19 = arith.constant dense<0.000000e+00> : vector<8x32xf32>
    %43 = tpu.matmul %42, %32, %cst_19 {dimension_numbers = #tpu.dot_dimension_numbers<[0], [0], [1], [1], [0, 1, 1, 1], [], []>} : vector<16x8xf32>, vector<16x32xf32>, vector<8x32xf32> -> vector<8x32xf32>
    %c8 = arith.constant 8 : index
    %c0_20 = arith.constant 0 : index
    %44 = vector.load %arg8[%c8, %c0_20] : memref<16x32xf32, #tpu.memory_space<vmem>>, vector<8x32xf32>
    tpu.vector_store %arg8[%c8, %c0_20], %43 {strides = array<i32>} : memref<16x32xf32, #tpu.memory_space<vmem>>, vector<8x32xf32>,
    %c0_21 = arith.constant 0 : index
    %c0_22 = arith.constant 0 : index
    %45 = vector.load %arg3[%c0_21, %c0_22] : memref<16x64xf32, #tpu.memory_space<vmem>>, vector<16x64xf32>
    %cst_23 = arith.constant dense<0.000000e+00> : vector<16x32xf32>
    %46 = tpu.matmul %45, %4, %cst_23 {dimension_numbers = #tpu.dot_dimension_numbers<[1], [0], [0], [1], [0, 0, 1, 1], [], []>} : vector<16x64xf32>, vector<64x32xf32>, vector<16x32xf32> -> vector<16x32xf32>
    %47 = vector.broadcast %6 : vector<1x32xf32> to vector<16x32xf32>
    %48 = arith.addf %46, %47 : vector<16x32xf32>
    %cst_24 = arith.constant dense<0.000000e+00> : vector<16x8xf32>
    %49 = tpu.matmul %48, %0, %cst_24 {dimension_numbers = #tpu.dot_dimension_numbers<[1], [1], [0], [0], [0, 0, 1, 0], [], []>} : vector<16x32xf32>, vector<8x32xf32>, vector<16x8xf32> -> vector<16x8xf32>
    %c0_25 = arith.constant 0 : index
    %c0_26 = arith.constant 0 : index
    %50 = vector.load %arg4[%c0_25, %c0_26] : memref<16x8xf32, #tpu.memory_space<vmem>>, vector<16x8xf32>
    %cst_27 = arith.constant 0.000000e+00 : f32
    %51 = vector.broadcast %cst_27 : f32 to vector<16x8xf32>
    %52 = arith.cmpf ogt, %50, %51 : vector<16x8xf32>
    %cst_28 = arith.constant -1.000000e+04 : f32
    %53 = vector.broadcast %cst_28 : f32 to vector<16x8xf32>
    %54 = arith.select %52, %49, %53 : vector<16x8xi1>, vector<16x8xf32>
    %cst_29 = arith.constant dense<0xFF800000> : vector<16xf32>
    %55 = vector.multi_reduction <maximumf>, %54, %cst_29 [1] : vector<16x8xf32> to vector<16xf32>
    %56 = vector.shape_cast %55 : vector<16xf32> to vector<16x1xf32>
    %57 = vector.broadcast %56 : vector<16x1xf32> to vector<16x8xf32>
    %58 = arith.subf %54, %57 : vector<16x8xf32>
    %59 = math.exp %58 : vector<16x8xf32>
    %cst_30 = arith.constant dense<0.000000e+00> : vector<16xf32>
    %60 = vector.multi_reduction <add>, %59, %cst_30 [1] : vector<16x8xf32> to vector<16xf32>
    %61 = vector.shape_cast %60 : vector<16xf32> to vector<16x1xf32>
    %62 = tpu.reciprocal %61 {approx = true} : vector<16x1xf32> -> vector<16x1xf32>
    %63 = vector.broadcast %62 : vector<16x1xf32> to vector<16x8xf32>
    %64 = arith.mulf %59, %63 : vector<16x8xf32>
    %c0_31 = arith.constant 0 : index
    %c0_32 = arith.constant 0 : index
    %65 = vector.load %arg2[%c0_31, %c0_32] : memref<16x32xf32, #tpu.memory_space<vmem>>, vector<16x32xf32>
    %cst_33 = arith.constant dense<0.000000e+00> : vector<16x32xf32>
    %66 = tpu.matmul %64, %0, %cst_33 {dimension_numbers = #tpu.dot_dimension_numbers<[1], [0], [0], [1], [0, 0, 1, 1], [], []>} : vector<16x8xf32>, vector<8x32xf32>, vector<16x32xf32> -> vector<16x32xf32>
    %67 = arith.addf %65, %66 : vector<16x32xf32>
    %cst_34 = arith.constant 0.000000e+00 : f32
    %68 = vector.broadcast %cst_34 : f32 to vector<16x32xf32>
    %69 = arith.maximumf %67, %68 : vector<16x32xf32>
    %c0_35 = arith.constant 0 : index
    %c0_36 = arith.constant 0 : index
    %70 = vector.load %arg9[%c0_35, %c0_36] : memref<16x32xf32, #tpu.memory_space<vmem>>, vector<16x32xf32>
    tpu.vector_store %arg9[%c0_35, %c0_36], %69 {strides = array<i32>} : memref<16x32xf32, #tpu.memory_space<vmem>>, vector<16x32xf32>,
    return
  }
}

module attributes {stable_mosaic.version = 11 : i64} {
  func.func @_sent_level_kernel(%arg0: memref<16x64xf32, #tpu.memory_space<vmem>>, %arg1: memref<16x8xf32, #tpu.memory_space<vmem>>, %arg2: memref<16x32xf32, #tpu.memory_space<vmem>>, %arg3: memref<8x32xf32, #tpu.memory_space<vmem>>, %arg4: memref<8x32xf32, #tpu.memory_space<vmem>>, %arg5: memref<96x32xf32, #tpu.memory_space<vmem>>, %arg6: memref<2x32xf32, #tpu.memory_space<vmem>>, %arg7: memref<1x8xf32, #tpu.memory_space<vmem>>, %arg8: memref<2x8xf32, #tpu.memory_space<vmem>>) attributes {dimension_semantics = [], scalar_prefetch = 0 : i64, scratch_operands = 0 : i64, tpu.core_type = #tpu.core_type<tc>} {
    %c0 = arith.constant 0 : index
    %c0_0 = arith.constant 0 : index
    %0 = vector.load %arg3[%c0, %c0_0] : memref<8x32xf32, #tpu.memory_space<vmem>>, vector<8x32xf32>
    %c0_1 = arith.constant 0 : index
    %c0_2 = arith.constant 0 : index
    %1 = vector.load %arg4[%c0_1, %c0_2] : memref<8x32xf32, #tpu.memory_space<vmem>>, vector<8x32xf32>
    %c0_3 = arith.constant 0 : index
    %c0_4 = arith.constant 0 : index
    %2 = vector.load %arg5[%c0_3, %c0_4] : memref<96x32xf32, #tpu.memory_space<vmem>>, vector<96x32xf32>
    %c0_5 = arith.constant 0 : index
    %c0_6 = arith.constant 0 : index
    %3 = vector.load %arg6[%c0_5, %c0_6] : memref<2x32xf32, #tpu.memory_space<vmem>>, vector<2x32xf32>
    %4 = vector.extract_strided_slice %2 {offsets = [0, 0], sizes = [64, 32], strides = [1, 1]} : vector<96x32xf32> to vector<64x32xf32>
    %5 = vector.extract_strided_slice %2 {offsets = [64, 0], sizes = [32, 32], strides = [1, 1]} : vector<96x32xf32> to vector<32x32xf32>
    %6 = vector.extract_strided_slice %3 {offsets = [0, 0], sizes = [1, 32], strides = [1, 1]} : vector<2x32xf32> to vector<1x32xf32>
    %7 = vector.extract_strided_slice %3 {offsets = [1, 0], sizes = [1, 32], strides = [1, 1]} : vector<2x32xf32> to vector<1x32xf32>
    %c0_7 = arith.constant 0 : index
    %c0_8 = arith.constant 0 : index
    %8 = vector.load %arg7[%c0_7, %c0_8] : memref<1x8xf32, #tpu.memory_space<vmem>>, vector<1x8xf32>
    %c0_9 = arith.constant 0 : index
    %c0_10 = arith.constant 0 : index
    %9 = vector.load %arg0[%c0_9, %c0_10] : memref<16x64xf32, #tpu.memory_space<vmem>>, vector<16x64xf32>
    %cst = arith.constant dense<0.000000e+00> : vector<16x32xf32>
    %10 = tpu.matmul %9, %4, %cst {dimension_numbers = #tpu.dot_dimension_numbers<[1], [0], [0], [1], [0, 0, 1, 1], [], []>} : vector<16x64xf32>, vector<64x32xf32>, vector<16x32xf32> -> vector<16x32xf32>
    %11 = vector.broadcast %6 : vector<1x32xf32> to vector<16x32xf32>
    %12 = arith.addf %10, %11 : vector<16x32xf32>
    %cst_11 = arith.constant dense<0.000000e+00> : vector<16x8xf32>
    %13 = tpu.matmul %12, %0, %cst_11 {dimension_numbers = #tpu.dot_dimension_numbers<[1], [1], [0], [0], [0, 0, 1, 0], [], []>} : vector<16x32xf32>, vector<8x32xf32>, vector<16x8xf32> -> vector<16x8xf32>
    %c0_12 = arith.constant 0 : index
    %c0_13 = arith.constant 0 : index
    %14 = vector.load %arg1[%c0_12, %c0_13] : memref<16x8xf32, #tpu.memory_space<vmem>>, vector<16x8xf32>
    %cst_14 = arith.constant 0.000000e+00 : f32
    %15 = vector.broadcast %cst_14 : f32 to vector<16x8xf32>
    %16 = arith.cmpf ogt, %14, %15 : vector<16x8xf32>
    %cst_15 = arith.constant -1.000000e+04 : f32
    %17 = vector.broadcast %cst_15 : f32 to vector<16x8xf32>
    %18 = arith.select %16, %13, %17 : vector<16x8xi1>, vector<16x8xf32>
    %19 = tpu.iota {dimensions = array<i32: 0>} : vector<8x8xi32>
    %20 = tpu.iota {dimensions = array<i32: 1>} : vector<8x8xi32>
    %21 = arith.cmpi eq, %19, %20 : vector<8x8xi32>
    %22 = vector.extract_strided_slice %18 {offsets = [0, 0], sizes = [8, 8], strides = [1, 1]} : vector<16x8xf32> to vector<8x8xf32>
    %23 = vector.extract_strided_slice %12 {offsets = [0, 0], sizes = [8, 32], strides = [1, 1]} : vector<16x32xf32> to vector<8x32xf32>
    %cst_16 = arith.constant dense<0xFF800000> : vector<8xf32>
    %24 = vector.multi_reduction <maximumf>, %22, %cst_16 [0] : vector<8x8xf32> to vector<8xf32>
    %25 = vector.shape_cast %24 : vector<8xf32> to vector<1x8xf32>
    %26 = vector.broadcast %25 : vector<1x8xf32> to vector<8x8xf32>
    %27 = arith.subf %22, %26 : vector<8x8xf32>
    %28 = math.exp %27 : vector<8x8xf32>
    %cst_17 = arith.constant dense<0.000000e+00> : vector<8xf32>
    %29 = vector.multi_reduction <add>, %28, %cst_17 [0] : vector<8x8xf32> to vector<8xf32>
    %30 = vector.shape_cast %29 : vector<8xf32> to vector<1x8xf32>
    %31 = tpu.reciprocal %30 {approx = true} : vector<1x8xf32> -> vector<1x8xf32>
    %32 = vector.broadcast %31 : vector<1x8xf32> to vector<8x8xf32>
    %33 = arith.mulf %28, %32 : vector<8x8xf32>
    %cst_18 = arith.constant dense<0.000000e+00> : vector<8x32xf32>
    %34 = tpu.matmul %33, %23, %cst_18 {dimension_numbers = #tpu.dot_dimension_numbers<[0], [0], [1], [1], [0, 1, 1, 1], [], []>} : vector<8x8xf32>, vector<8x32xf32>, vector<8x32xf32> -> vector<8x32xf32>
    %c0_19 = arith.constant 0 : index
    %c0_20 = arith.constant 0 : index
    %35 = vector.load %arg2[%c0_19, %c0_20] : memref<16x32xf32, #tpu.memory_space<vmem>>, vector<8x32xf32>
    %36 = arith.maximumf %35, %34 : vector<8x32xf32>
    %cst_21 = arith.constant dense<0.000000e+00> : vector<8x32xf32>
    %37 = tpu.matmul %36, %5, %cst_21 {dimension_numbers = #tpu.dot_dimension_numbers<[1], [0], [0], [1], [0, 0, 1, 1], [], []>} : vector<8x32xf32>, vector<32x32xf32>, vector<8x32xf32> -> vector<8x32xf32>
    %38 = vector.broadcast %7 : vector<1x32xf32> to vector<8x32xf32>
    %39 = arith.addf %37, %38 : vector<8x32xf32>
    %cst_22 = arith.constant 0.000000e+00 : f32
    %40 = vector.broadcast %cst_22 : f32 to vector<8x32xf32>
    %41 = arith.maximumf %39, %40 : vector<8x32xf32>
    %cst_23 = arith.constant dense<0.000000e+00> : vector<8x8xf32>
    %42 = tpu.matmul %41, %1, %cst_23 {dimension_numbers = #tpu.dot_dimension_numbers<[1], [1], [0], [0], [0, 0, 1, 0], [], []>} : vector<8x32xf32>, vector<8x32xf32>, vector<8x8xf32> -> vector<8x8xf32>
    %cst_24 = arith.constant 0.000000e+00 : f32
    %43 = vector.broadcast %cst_24 : f32 to vector<8x8xf32>
    %44 = arith.select %21, %42, %43 : vector<8x8xi1>, vector<8x8xf32>
    %cst_25 = arith.constant dense<0.000000e+00> : vector<8xf32>
    %45 = vector.multi_reduction <add>, %44, %cst_25 [0] : vector<8x8xf32> to vector<8xf32>
    %46 = vector.shape_cast %45 : vector<8xf32> to vector<1x8xf32>
    %47 = arith.addf %46, %8 : vector<1x8xf32>
    %48 = arith.negf %47 : vector<1x8xf32>
    %49 = math.exp %48 : vector<1x8xf32>
    %cst_26 = arith.constant 1.000000e+00 : f32
    %50 = vector.broadcast %cst_26 : f32 to vector<1x8xf32>
    %51 = arith.addf %50, %49 : vector<1x8xf32>
    %52 = arith.divf %50, %51 : vector<1x8xf32>
    %c0_27 = arith.constant 0 : index
    %c0_28 = arith.constant 0 : index
    %53 = vector.load %arg8[%c0_27, %c0_28] : memref<2x8xf32, #tpu.memory_space<vmem>>, vector<1x8xf32>
    tpu.vector_store %arg8[%c0_27, %c0_28], %52 {strides = array<i32>} : memref<2x8xf32, #tpu.memory_space<vmem>>, vector<1x8xf32>,
    %54 = vector.extract_strided_slice %18 {offsets = [8, 0], sizes = [8, 8], strides = [1, 1]} : vector<16x8xf32> to vector<8x8xf32>
    %55 = vector.extract_strided_slice %12 {offsets = [8, 0], sizes = [8, 32], strides = [1, 1]} : vector<16x32xf32> to vector<8x32xf32>
    %cst_29 = arith.constant dense<0xFF800000> : vector<8xf32>
    %56 = vector.multi_reduction <maximumf>, %54, %cst_29 [0] : vector<8x8xf32> to vector<8xf32>
    %57 = vector.shape_cast %56 : vector<8xf32> to vector<1x8xf32>
    %58 = vector.broadcast %57 : vector<1x8xf32> to vector<8x8xf32>
    %59 = arith.subf %54, %58 : vector<8x8xf32>
    %60 = math.exp %59 : vector<8x8xf32>
    %cst_30 = arith.constant dense<0.000000e+00> : vector<8xf32>
    %61 = vector.multi_reduction <add>, %60, %cst_30 [0] : vector<8x8xf32> to vector<8xf32>
    %62 = vector.shape_cast %61 : vector<8xf32> to vector<1x8xf32>
    %63 = tpu.reciprocal %62 {approx = true} : vector<1x8xf32> -> vector<1x8xf32>
    %64 = vector.broadcast %63 : vector<1x8xf32> to vector<8x8xf32>
    %65 = arith.mulf %60, %64 : vector<8x8xf32>
    %cst_31 = arith.constant dense<0.000000e+00> : vector<8x32xf32>
    %66 = tpu.matmul %65, %55, %cst_31 {dimension_numbers = #tpu.dot_dimension_numbers<[0], [0], [1], [1], [0, 1, 1, 1], [], []>} : vector<8x8xf32>, vector<8x32xf32>, vector<8x32xf32> -> vector<8x32xf32>
    %c8 = arith.constant 8 : index
    %c0_32 = arith.constant 0 : index
    %67 = vector.load %arg2[%c8, %c0_32] : memref<16x32xf32, #tpu.memory_space<vmem>>, vector<8x32xf32>
    %68 = arith.maximumf %67, %66 : vector<8x32xf32>
    %cst_33 = arith.constant dense<0.000000e+00> : vector<8x32xf32>
    %69 = tpu.matmul %68, %5, %cst_33 {dimension_numbers = #tpu.dot_dimension_numbers<[1], [0], [0], [1], [0, 0, 1, 1], [], []>} : vector<8x32xf32>, vector<32x32xf32>, vector<8x32xf32> -> vector<8x32xf32>
    %70 = vector.broadcast %7 : vector<1x32xf32> to vector<8x32xf32>
    %71 = arith.addf %69, %70 : vector<8x32xf32>
    %cst_34 = arith.constant 0.000000e+00 : f32
    %72 = vector.broadcast %cst_34 : f32 to vector<8x32xf32>
    %73 = arith.maximumf %71, %72 : vector<8x32xf32>
    %cst_35 = arith.constant dense<0.000000e+00> : vector<8x8xf32>
    %74 = tpu.matmul %73, %1, %cst_35 {dimension_numbers = #tpu.dot_dimension_numbers<[1], [1], [0], [0], [0, 0, 1, 0], [], []>} : vector<8x32xf32>, vector<8x32xf32>, vector<8x8xf32> -> vector<8x8xf32>
    %cst_36 = arith.constant 0.000000e+00 : f32
    %75 = vector.broadcast %cst_36 : f32 to vector<8x8xf32>
    %76 = arith.select %21, %74, %75 : vector<8x8xi1>, vector<8x8xf32>
    %cst_37 = arith.constant dense<0.000000e+00> : vector<8xf32>
    %77 = vector.multi_reduction <add>, %76, %cst_37 [0] : vector<8x8xf32> to vector<8xf32>
    %78 = vector.shape_cast %77 : vector<8xf32> to vector<1x8xf32>
    %79 = arith.addf %78, %8 : vector<1x8xf32>
    %80 = arith.negf %79 : vector<1x8xf32>
    %81 = math.exp %80 : vector<1x8xf32>
    %cst_38 = arith.constant 1.000000e+00 : f32
    %82 = vector.broadcast %cst_38 : f32 to vector<1x8xf32>
    %83 = arith.addf %82, %81 : vector<1x8xf32>
    %84 = arith.divf %82, %83 : vector<1x8xf32>
    %c1 = arith.constant 1 : index
    %c0_39 = arith.constant 0 : index
    %85 = vector.load %arg8[%c1, %c0_39] : memref<2x8xf32, #tpu.memory_space<vmem>>, vector<1x8xf32>
    tpu.vector_store %arg8[%c1, %c0_39], %84 {strides = array<i32>} : memref<2x8xf32, #tpu.memory_space<vmem>>, vector<1x8xf32>,
    return
  }
}

</mosaic_0001>

<bundles_post_ra>
// kernel: custom-call.17
= control target key start
LH: loop header
LB: loop body
LE: loop exit
PB: predicated region body
PF: predicated region fallthrough
CT: control target
= control target key end

     0   :  { %s6_s0 = inlined_call_operand.vmem [shape: f32[16,2,2,32], index: 0, kind: output, shape index: {}]  }

// kernel: custom-call.9
= control target key start
LH: loop header
LB: loop body
LE: loop exit
PB: predicated region body
PF: predicated region fallthrough
CT: control target
= control target key end

     0   :  { %s6_s0 = inlined_call_operand.vmem [shape: f32[2,2,32], index: 0, kind: output, shape index: {}]  }

// kernel: custom-call.8
= control target key start
LH: loop header
LB: loop body
LE: loop exit
PB: predicated region body
PF: predicated region fallthrough
CT: control target
= control target key end

     0   :  { %s6_s0 = inlined_call_operand.vmem [shape: f32[2,8,32], index: 0, kind: output, shape index: {}]  }

// kernel: custom-call.18
= control target key start
LH: loop header
LB: loop body
LE: loop exit
PB: predicated region body
PF: predicated region fallthrough
CT: control target
= control target key end

     0   :  { %s6_s0 = inlined_call_operand.vmem [shape: f32[8,2,2,32], index: 0, kind: output, shape index: {}]  }

// kernel: run.3
= control target key start
LH: loop header
LB: loop body
LE: loop exit
PB: predicated region body
PF: predicated region fallthrough
CT: control target
= control target key end

     0   :  { %v580_v0 = vmov 0.0   ;;  %vm43_vm0 = vcmask 261120   ;;  %vm581_vm1 = vmmov 0   ;;  %v190_v17 = vlaneseq  ;;  %s752_s2 = inlined_call_operand.vmem [shape: f32[160,32], index: 2, kind: input, shape index: {}]   ;;  %s753_s1 = inlined_call_operand.vmem [shape: f32[8,32], index: 1, kind: input, shape index: {}]   ;;  %s754_s0 = inlined_call_operand.vmem [shape: f32[8,32], index: 0, kind: input, shape index: {}]   ;;  %s755_s3 = inlined_call_operand.vmem [shape: f32[6,32], index: 3, kind: input, shape index: {}]   ;;  %s756_s6 = inlined_call_operand.vmem [shape: f32[8,32], index: 6, kind: output, shape index: {2}]   ;;  %s757_s4 = inlined_call_operand.vmem [shape: f32[8,32], index: 4, kind: output, shape index: {0}]   ;;  %s758_s5 = inlined_call_operand.vmem [shape: f32[8,32], index: 5, kind: output, shape index: {1}]  }
   0x1   :  { %511 = vmatprep.subr.mxu0 %v580_v0  ;;  %522 = vmatprep.subr.mxu1 %v580_v0  ;;  %v29_v1 = vld [vmem:[%s752_s2 + $0x38] sm:$0xff]  ;;  %v28_v3 = vld [vmem:[%s752_s2 + $0x30] sm:$0xff]  ;;  %v27_v5 = vld [vmem:[%s752_s2 + $0x28] sm:$0xff] }
   0x2   :  { %v25_v2 = vld [vmem:[%s752_s2 + $0x18] sm:$0xff]  ;;  %512 = vmatpush3.msra.mxu0 %v29_v1  ;;  %v24_v4 = vld [vmem:[%s752_s2 + $0x10] sm:$0xff]  ;;  %v23_v6 = vld [vmem:[%s752_s2 + $0x8] sm:$0xff]  ;;  %519 = vmatprep.mubr.msk.f32.mxu0 %vm581_vm1, %v580_v0  ;;  %v684_v18 = vshrl.u32 %v190_v17, 7 }
   0x3   :  { %523 = vmatpush3.msra.mxu1 %v25_v2  ;;  %513 = vmatprep.subr.mxu0 %v580_v0  ;;  %v26_v7 = vld [vmem:[%s752_s2 + $0x20] sm:$0xff]  ;;  %v33_v11 = vld [vmem:[%s752_s2 + $0x58] sm:$0xff]  ;;  %v32_v12 = vld [vmem:[%s752_s2 + $0x50] sm:$0xff] }
   0x4   :  { %524 = vmatprep.subr.mxu1 %v580_v0  ;;  %514 = vmatpush3.msra.mxu0 %v28_v3  ;;  %v22_v8 = vld [vmem:[%s752_s2] sm:$0xff]  ;;  %v31_v13 = vld [vmem:[%s752_s2 + $0x48] sm:$0xff]  ;;  %v192_v19 = vsub.s32 0, %v684_v18  ;;  %v198_v29 = vsub.s32 1, %v684_v18  ;;  %v37_v50 = vld [vmem:[%s752_s2 + $0x78] sm:$0xff]  ;;  %v304_v61 = vsub.s32 2, %v684_v18 }
   0x5   :  { %525 = vmatpush3.msra.mxu1 %v24_v4  ;;  %515 = vmatprep.subr.mxu0 %v580_v0  ;;  %v21_v9 = vld [vmem:[%s753_s1] sm:$0xff]  ;;  %v41_v51 = vld [vmem:[%s752_s2 + $0x98] sm:$0xff]  ;;  %v36_v52 = vld [vmem:[%s752_s2 + $0x70] sm:$0xff]  ;;  %v309_v62 = vsub.s32 3, %v684_v18 }
   0x6   :  { %526 = vmatprep.subr.mxu1 %v580_v0  ;;  %516 = vmatpush3.msra.mxu0 %v27_v5  ;;  %v20_v10 = vld [vmem:[%s754_s0] sm:$0xff]  ;;  %v279_v15 = vmul.f32 %v21_v9, %v21_v9  ;;  %v40_v53 = vld [vmem:[%s752_s2 + $0x90] sm:$0xff]  ;;  %v35_v54 = vld [vmem:[%s752_s2 + $0x68] sm:$0xff] }
   0x7   :  { %527 = vmatpush3.msra.mxu1 %v23_v6  ;;  %517 = vmatprep.subr.mxu0 %v580_v0  ;;  %v30_v14 = vld [vmem:[%s752_s2 + $0x40] sm:$0xff]  ;;  %v39_v55 = vld [vmem:[%s752_s2 + $0x88] sm:$0xff]  ;;  %v393_v6 = vsub.s32 5, %v684_v18 }
   0x8   :  { %528 = vmatprep.subr.mxu1 %v580_v0  ;;  %518 = vmatpush3.msra.mxu0 %v26_v7  ;;  %v280_v16 = vsel %vm43_vm0, %v279_v15, 0.0  ;;  %v690_v20 = vld [vmem:[%s755_s3] sm:$0x3f] }
   0x9   :  { %529 = vmatpush3.msra.mxu1 %v22_v8  ;;  %530 = vmatprep.mubr.msk.f32.mxu1 %vm581_vm1, %v580_v0  ;;  %v193_v21 = vrot.slane %v690_v20, %v192_v19  ;;  %v199_v30 = vrot.slane %v690_v20, %v198_v29  ;;  %v34_v56 = vld [vmem:[%s752_s2 + $0x60] sm:$0xff]  ;;  %v305_v63 = vrot.slane %v690_v20, %v304_v61 }
   0xa   :  { %520 = vmatmul.mubr.msk.f32.vlgmr.msra.gmra.mxu0 %vm43_vm0, %v21_v9  ;;  %531 = vmatmul.mubr.msk.f32.vlgmr.msra.gmra.mxu1 %vm43_vm0, %v20_v10  ;;  %v38_v57 = vld [vmem:[%s752_s2 + $0x80] sm:$0xff]  ;;  %v310_v3 = vrot.slane %v690_v20, %v309_v62  ;;  %v394_v8 = vrot.slane %v690_v20, %v393_v6 }
   0xb   :  { %533 = vmatprep.subr.mxu0 %v580_v0  ;;  %541 = vmatprep.mubr.msk.f32.mxu0 %vm581_vm1, %v580_v0 }
   0xc   :  { %544 = vmatprep.subr.mxu1 %v580_v0  ;;  %552 = vmatprep.mubr.msk.f32.mxu1 %vm581_vm1, %v580_v0 }
   0xd   :  { %534 = vmatpush3.msra.mxu0 %v33_v11  ;;  %281 = vadd.xlane.f32.xlu0 %v280_v16 }
   0xe   :  { %535 = vmatprep.subr.mxu0 %v580_v0  ;;  %545 = vmatpush3.msra.mxu1 %v37_v50 }
   0xf   :  { %536 = vmatpush3.msra.mxu0 %v32_v12  ;;  %546 = vmatprep.subr.mxu1 %v580_v0 }
  0x10   :  { %537 = vmatprep.subr.mxu0 %v580_v0  ;;  %547 = vmatpush3.msra.mxu1 %v36_v52 }
  0x11   :  { %538 = vmatpush3.msra.mxu0 %v31_v13  ;;  %548 = vmatprep.subr.mxu1 %v580_v0 }
  0x12   :  { %539 = vmatprep.subr.mxu0 %v580_v0  ;;  %549 = vmatpush3.msra.mxu1 %v35_v54 }
  0x13   :  { %540 = vmatpush3.msra.mxu0 %v30_v14  ;;  %550 = vmatprep.subr.mxu1 %v580_v0 }
  0x14   :  { %555 = vmatprep.subr.mxu0 %v580_v0  ;;  %551 = vmatpush3.msra.mxu1 %v34_v56 }
  0x96   :  { %v282_v35 = vpop.xlane.xlu0 %281 }
  0x97   :  { %v283_v36 = vadd.f32 1e-12, %v282_v35 }
  0xca   :  { %v113_v22 = vpop.f32.mrf.mxu0  ;;  %v186_v23 = vpop.f32.mrf.mxu1 }
  0xcb   :  { %v187_v24 = vadd.f32 %v186_v23, %v113_v22 }
  0xcc   :  { %v521_v25 = vpop.f32.mrf.mxu0  ;;  %v532_v26 = vpop.f32.mrf.mxu1 }
  0xcd   :  { %v194_v27 = vadd.f32 %v193_v21, %v187_v24 }
  0xcf   :  { %v195_v28 = vmax.f32 %v194_v27, 0.0 }
  0xd1   :  { %542 = vmatmul.mubr.msk.f32.vlgmr.msra.gmra.mxu0 %vm43_vm0, %v195_v28 }
  0xd2   :  { %563 = vmatprep.mubr.msk.f32.mxu0 %vm581_vm1, %v580_v0  ;;  %556 = vmatpush3.msra.mxu0 %v41_v51 }
  0xd3   :  { %557 = vmatprep.subr.mxu0 %v580_v0 }
  0xd4   :  { %558 = vmatpush3.msra.mxu0 %v40_v53 }
  0xd5   :  { %559 = vmatprep.subr.mxu0 %v580_v0 }
  0xd6   :  { %560 = vmatpush3.msra.mxu0 %v39_v55 }
  0xd7   :  { %561 = vmatprep.subr.mxu0 %v580_v0  ;;  %v314_v0 = vsub.s32 4, %v684_v18 }
  0xd8   :  { %562 = vmatpush3.msra.mxu0 %v38_v57 }
  0xd9   :  { %v315_v7 = vrot.slane %v690_v20, %v314_v0 }
 0x191   :  { %v269_v31 = vpop.f32.mrf.mxu0 }
 0x192   :  { %v270_v32 = vadd.f32 %v269_v31, %v199_v30 }
 0x193   :  { %v543_v33 = vpop.f32.mrf.mxu0 }
 0x194   :  { %v483_v34 = vmul.f32 -1.442695, %v270_v32 }
 0x196   :  { %568 = vpow2.f32 %v483_v34 }
 0x197   :  { %570 = vrsqrt.f32 %v283_v36 }
 0x1a3   :  { %v569_v37 = vpop.eup %568 }
 0x1a4   :  { %v276_v38 = vadd.f32 1.0, %v569_v37  ;;  %v571_v39 = vpop.eup %570 }
 0x1a5   :  { %v285_v40 = vmul.f32 %v571_v39, %v21_v9 }
 0x1a6   :  { %572 = vrcp.f32 %v276_v38 }
 0x1b3   :  { %v573_v41 = vpop.eup %572 }
 0x1b4   :  { %467 = vst.msk [vmem:[%s756_s6] sm:$0xff] %vm43_vm0, %v573_v41  ;;  %v286_v42 = vmul.f32 %v573_v41, %v20_v10 }
 0x1b6   :  { %v287_v43 = vadd.f32 %v286_v42, %v285_v40 }
 0x1b8   :  { %v288_v44 = vsel %vm43_vm0, %v287_v43, 0.0 }
 0x1b9   :  { %289 = vadd.xlane.f32.xlu0 %v288_v44 }
 0x242   :  { %v290_v45 = vpop.xlane.xlu0 %289 }
 0x243   :  { %v292_v46 = vmul.f32 0.03125, %v290_v45 }
 0x245   :  { %v293_v47 = vsub.f32 %v287_v43, %v292_v46 }
 0x247   :  { %v294_v48 = vmul.f32 %v293_v47, %v293_v47 }
 0x249   :  { %v295_v49 = vsel %vm43_vm0, %v294_v48, 0.0 }
 0x24a   :  { %296 = vadd.xlane.f32.xlu1 %v295_v49 }
 0x2d3   :  { %v297_v58 = vpop.xlane.xlu1 %296 }
 0x2d4   :  { %v298_v59 = vmul.f32 0.03125, %v297_v58 }
 0x2d6   :  { %v299_v60 = vadd.f32 1e-05, %v298_v59 }
 0x2d8   :  { %574 = vrsqrt.f32 %v299_v60 }
 0x2e5   :  { %v575_v1 = vpop.eup %574 }
 0x2e6   :  { %v301_v2 = vmul.f32 %v575_v1, %v293_v47 }
 0x2e8   :  { %v306_v4 = vmul.f32 %v305_v63, %v301_v2 }
 0x2ea   :  { %v311_v5 = vadd.f32 %v310_v3, %v306_v4 }
 0x2ec   :  { %553 = vmatmul.mubr.msk.f32.vlgmr.msra.gmra.mxu1 %vm43_vm0, %v311_v5  ;;  %564 = vmatmul.mubr.msk.f32.vlgmr.msra.gmra.mxu0 %vm43_vm0, %v311_v5 }
 0x3ac   :  { %v385_v9 = vpop.f32.mrf.mxu1  ;;  %v461_v10 = vpop.f32.mrf.mxu0 }
 0x3ad   :  { %v386_v11 = vadd.f32 %v385_v9, %v315_v7  ;;  %v462_v12 = vadd.f32 %v461_v10, %v394_v8 }
 0x3ae   :  { %v554_v13 = vpop.f32.mrf.mxu1  ;;  %v565_v14 = vpop.f32.mrf.mxu0 }
 0x3af   :  { %576 = vtanh.f32 %v386_v11 }
 0x3b0   :  { %578 = vtanh.f32 %v462_v12 }
 0x3bc   :  { %v577_v15 = vpop.eup %576 }
 0x3bd   :  { %v579_v16 = vpop.eup %578  ;;  %390 = vst.msk [vmem:[%s757_s4] sm:$0xff] %vm43_vm0, %v577_v15 }
 0x3be   :  { %466 = vst.msk [vmem:[%s758_s5] sm:$0xff] %vm43_vm0, %v579_v16 }

// kernel: run.4
= control target key start
LH: loop header
LB: loop body
LE: loop exit
PB: predicated region body
PF: predicated region fallthrough
CT: control target
= control target key end

     0   :  { %vm57_vm0 = vcmask 523264   ;;  %vm155_vm1 = vcmask 261120   ;;  %v981_v13 = vmov 0.0   ;;  %v53_v22 = vlaneseq  ;;  %s1207_s6 = inlined_call_operand.vmem [shape: f32[128,32], index: 6, kind: input, shape index: {}]   ;;  %s1208_s0 = inlined_call_operand.vmem [shape: f32[32,64], index: 0, kind: input, shape index: {}]   ;;  %s1209_s5 = inlined_call_operand.vmem [shape: f32[8,32], index: 5, kind: input, shape index: {}]   ;;  %s1210_s7 = inlined_call_operand.vmem [shape: f32[2,32], index: 7, kind: input, shape index: {}]   ;;  %s1211_s3 = inlined_call_operand.vmem [shape: f32[16,64], index: 3, kind: input, shape index: {}]   ;;  %s1212_s1 = inlined_call_operand.vmem [shape: f32[32,8], index: 1, kind: input, shape index: {}]   ;;  %s1213_s8 = inlined_call_operand.vmem [shape: f32[16,32], index: 8, kind: output, shape index: {0}]   ;;  %s1214_s4 = inlined_call_operand.vmem [shape: f32[16,8], index: 4, kind: input, shape index: {}]   ;;  %s1215_s2 = inlined_call_operand.vmem [shape: f32[16,32], index: 2, kind: input, shape index: {}]   ;;  %s1216_s9 = inlined_call_operand.vmem [shape: f32[16,32], index: 9, kind: output, shape index: {1}]  }
   0x1   :  { %v39_v0 = vld [vmem:[%s1207_s6 + $0x38] sm:$0xff]  ;;  %v38_v1 = vld [vmem:[%s1207_s6 + $0x30] sm:$0xff]  ;;  %v37_v2 = vld [vmem:[%s1207_s6 + $0x28] sm:$0xff]  ;;  %vm982_vm2 = vmmov 0   ;;  %vm268_vm5 = vcmask 64512   ;;  %vm328_vm8 = vcmask 130048  }
   0x2   :  { %886 = vmatprep.subr.mxu0 %v39_v0  ;;  %v49_v3 = vld [vmem:[%s1208_s0] sm:$0xff]  ;;  %v35_v5 = vld [vmem:[%s1207_s6 + $0x18] sm:$0xff]  ;;  %v34_v6 = vld [vmem:[%s1207_s6 + $0x10] sm:$0xff]  ;;  %v1107_v23 = vshrl.u32 %v53_v22, 7 }
   0x3   :  { %887 = vmatpush3.msra.mxu0 %v39_v0  ;;  %902 = vmatprep.mubr.msk.f32.mxu0 %vm57_vm0, %v49_v3  ;;  %v36_v4 = vld [vmem:[%s1207_s6 + $0x20] sm:$0xff]  ;;  %v33_v7 = vld [vmem:[%s1207_s6 + $0x8] sm:$0xff]  ;;  %v51_v10 = vld [vmem:[%s1208_s0 + $0x10] sm:$0xff] }
   0x4   :  { %888 = vmatprep.subr.mxu0 %v38_v1  ;;  %v32_v8 = vld [vmem:[%s1207_s6] sm:$0xff]  ;;  %v50_v9 = vld [vmem:[%s1208_s0 + $0x8] sm:$0xff]  ;;  %v52_v11 = vld [vmem:[%s1208_s0 + $0x18] sm:$0xff]  ;;  %v55_v24 = vsub.s32 0, %v1107_v23 }
   0x5   :  { %889 = vmatpush3.msra.mxu0 %v38_v1  ;;  %v1076_v12 = vld [vmem:[%s1209_s5] sm:$0xff]  ;;  %v47_v14 = vld [vmem:[%s1207_s6 + $0x78] sm:$0xff]  ;;  %v46_v15 = vld [vmem:[%s1207_s6 + $0x70] sm:$0xff] }
   0x6   :  { %890 = vmatprep.subr.mxu0 %v37_v2  ;;  %908 = vmatprep.subr.msk.mxu1 %vm155_vm1, %v1076_v12  ;;  %v45_v16 = vld [vmem:[%s1207_s6 + $0x68] sm:$0xff]  ;;  %v44_v17 = vld [vmem:[%s1207_s6 + $0x60] sm:$0xff]  ;;  %v43_v18 = vld [vmem:[%s1207_s6 + $0x58] sm:$0xff] }
   0x7   :  { %891 = vmatpush3.msra.mxu0 %v37_v2  ;;  %909 = vmatpush3.xpose.msk.msra.mxu1 %vm155_vm1, %v1076_v12  ;;  %v42_v19 = vld [vmem:[%s1207_s6 + $0x50] sm:$0xff]  ;;  %v41_v20 = vld [vmem:[%s1207_s6 + $0x48] sm:$0xff]  ;;  %v40_v21 = vld [vmem:[%s1207_s6 + $0x40] sm:$0xff] }
   0x8   :  { %892 = vmatprep.subr.mxu0 %v36_v4  ;;  %916 = vmatprep.subr.mxu1 %v981_v13  ;;  %v1113_v25 = vld [vmem:[%s1210_s7] sm:$0x3]  ;;  %v537_v36 = vld [vmem:[%s1211_s3 + $0x8] sm:$0xff]  ;;  %v259_v39 = vld [vmem:[%s1212_s1 + $0x18] sm:$0xff] }
   0x9   :  { %893 = vmatpush3.msra.mxu0 %v36_v4  ;;  %v56_v26 = vrot.slane %v1113_v25, %v55_v24  ;;  %v536_v35 = vld [vmem:[%s1211_s3] sm:$0xff]  ;;  %v257_v37 = vld [vmem:[%s1212_s1 + $0x8] sm:$0xff]  ;;  %v258_v42 = vld [vmem:[%s1212_s1 + $0x10] sm:$0xff]  ;;  %vm263_vm6 = vcmp.gt.f32.partialorder %v259_v39, 0.0 }
   0xa   :  { %894 = vmatprep.subr.mxu0 %v35_v5  ;;  %v256_v38 = vld [vmem:[%s1212_s1] sm:$0xff]  ;;  %vm261_vm3 = vcmp.gt.f32.partialorder %v257_v37, 0.0  ;;  %vm262_vm7 = vcmp.gt.f32.partialorder %v258_v42, 0.0 }
   0xb   :  { %895 = vmatpush3.msra.mxu0 %v35_v5  ;;  %vm260_vm4 = vcmp.gt.f32.partialorder %v256_v38, 0.0 }
   0xc   :  { %896 = vmatprep.subr.mxu0 %v34_v6 }
   0xd   :  { %897 = vmatpush3.msra.mxu0 %v34_v6 }
   0xe   :  { %898 = vmatprep.subr.mxu0 %v33_v7 }
   0xf   :  { %899 = vmatpush3.msra.mxu0 %v33_v7 }
  0x10   :  { %900 = vmatprep.subr.mxu0 %v32_v8 }
  0x11   :  { %901 = vmatpush3.msra.mxu0 %v32_v8 }
  0x12   :  { %903 = vmatmul.mubr.msk.f32.vlgmr.msra.gmra.mxu0 %vm57_vm0, %v50_v9  ;;  %930 = vmatprep.subr.mxu0 %v47_v14 }
  0x13   :  { %905 = vmatprep.mubr.msk.f32.mxu0 %vm57_vm0, %v51_v10  ;;  %931 = vmatpush3.msra.mxu0 %v47_v14 }
  0x14   :  { %932 = vmatprep.subr.mxu0 %v46_v15 }
  0x15   :  { %933 = vmatpush3.msra.mxu0 %v46_v15 }
  0x16   :  { %906 = vmatmul.mubr.msk.f32.gmra.mxu0 %vm57_vm0, %v52_v11  ;;  %934 = vmatprep.subr.mxu0 %v45_v16 }
  0x17   :  { %935 = vmatpush3.msra.mxu0 %v45_v16  ;;  %946 = vmatprep.mubr.msk.f32.mxu0 %vm57_vm0, %v536_v35 }
  0x18   :  { %936 = vmatprep.subr.mxu0 %v44_v17 }
  0x19   :  { %937 = vmatpush3.msra.mxu0 %v44_v17 }
  0x1a   :  { %938 = vmatprep.subr.mxu0 %v43_v18 }
  0x1b   :  { %939 = vmatpush3.msra.mxu0 %v43_v18 }
  0x1c   :  { %940 = vmatprep.subr.mxu0 %v42_v19 }
  0x1d   :  { %941 = vmatpush3.msra.mxu0 %v42_v19 }
  0x1e   :  { %942 = vmatprep.subr.mxu0 %v41_v20 }
  0x1f   :  { %943 = vmatpush3.msra.mxu0 %v41_v20 }
  0x20   :  { %944 = vmatprep.subr.mxu0 %v40_v21 }
  0x21   :  { %945 = vmatpush3.msra.mxu0 %v40_v21 }
  0x22   :  { %947 = vmatmul.mubr.msk.f32.vlgmr.msra.gmra.mxu0 %vm57_vm0, %v537_v36 }
  0xd2   :  { %v904_v27 = vpop.f32.mrf.mxu0 }
  0xd3   :  { %v142_v30 = vadd.f32 %v904_v27, %v56_v26 }
  0xd4   :  { %v136_v28 = vpop.f32.mrf.mxu0 }
  0xd5   :  { %v137_v29 = vadd.f32 %v136_v28, %v56_v26 }
  0xd6   :  { %v907_v31 = vpop.f32.mrf.mxu0 }
  0xd7   :  { %910 = vmatprep.mubr.msk.f32.mxu1 %vm155_vm1, %v137_v29  ;;  %v1120_v34 = vadd.f32 %v907_v31, %v56_v26 }
  0xd8   :  { %v146_v32 = vpop.f32.mrf.mxu0  ;;  %911 = vmatmul.mubr.msk.f32.vlgmr.msra.gmra.mxu1 %vm155_vm1, %v142_v30 }
  0xd9   :  { %v1118_v33 = vadd.f32 %v146_v32, %v56_v26  ;;  %917 = vmatpush3.msra.mxu1 %v142_v30 }
  0xda   :  { %918 = vmatprep.subr.mxu1 %v981_v13 }
  0xdb   :  { %919 = vmatpush3.msra.mxu1 %v137_v29  ;;  %913 = vmatprep.mubr.msk.f32.mxu1 %vm155_vm1, %v1118_v33 }
  0xdc   :  { %914 = vmatmul.mubr.msk.f32.gmra.mxu1 %vm155_vm1, %v1120_v34  ;;  %923 = vmatprep.subr.mxu1 %v981_v13 }
  0xdd   :  { %920 = vmatprep.mubr.msk.f32.mxu1 %vm982_vm2, %v981_v13 }
 0x198   :  { %v912_v40 = vpop.f32.mrf.mxu1 }
 0x199   :  { %v265_v41 = vsel %vm261_vm3, %v912_v40, -10000.0 }
 0x19a   :  { %v237_v43 = vpop.f32.mrf.mxu1  ;;  %v270_v45 = vsel %vm268_vm5, %v265_v41, -inf }
 0x19b   :  { %v264_v44 = vsel %vm260_vm4, %v237_v43, -10000.0 }
 0x19c   :  { %v269_v46 = vsel %vm268_vm5, %v264_v44, -inf  ;;  %v915_v47 = vpop.f32.mrf.mxu1 }
 0x19d   :  { %v271_v48 = vmax.f32 %v269_v46, %v270_v45  ;;  %v267_v49 = vsel %vm263_vm6, %v915_v47, -10000.0  ;;  %v540_v45 = vsub.s32 1, %v1107_v23  ;;  %v948_v46 = vpop.f32.mrf.mxu0 }
 0x19e   :  { %v247_v50 = vpop.f32.mrf.mxu1  ;;  %v404_v53 = vsel %vm268_vm5, %v267_v49, -inf }
 0x19f   :  { %v272_v51 = vrot.slane %v271_v48, 4  ;;  %v266_v52 = vsel %vm262_vm7, %v247_v50, -10000.0  ;;  %v541_v47 = vrot.slane %v1113_v25, %v540_v45 }
 0x1a0   :  { %v403_v54 = vsel %vm268_vm5, %v266_v52, -inf }
 0x1a1   :  { %v273_v55 = vmax.f32 %v271_v48, %v272_v51  ;;  %v405_v56 = vmax.f32 %v403_v54, %v404_v53  ;;  %v614_v48 = vpop.f32.mrf.mxu0  ;;  %v620_v23 = vadd.f32 %v948_v46, %v541_v47 }
 0x1a2   :  { %v615_v50 = vadd.f32 %v614_v48, %v541_v47 }
 0x1a3   :  { %v274_v57 = vrot.slane %v273_v55, 2  ;;  %v406_v58 = vrot.slane %v405_v56, 4 }
 0x1a5   :  { %v275_v59 = vmax.f32 %v273_v55, %v274_v57  ;;  %v407_v60 = vmax.f32 %v405_v56, %v406_v58 }
 0x1a7   :  { %v276_v61 = vrot.slane %v275_v59, 1  ;;  %v408_v62 = vrot.slane %v407_v60, 2 }
 0x1a9   :  { %v277_v63 = vmax.f32 %v275_v59, %v276_v61  ;;  %v409_v0 = vmax.f32 %v407_v60, %v408_v62 }
 0x1ab   :  { %v278_v1 = vsub.f32 %v264_v44, %v277_v63  ;;  %v279_v2 = vsub.f32 %v265_v41, %v277_v63  ;;  %v410_v3 = vrot.slane %v409_v0, 1 }
 0x1ad   :  { %v280_v4 = vmul.f32 1.442695, %v278_v1  ;;  %v282_v5 = vmul.f32 1.442695, %v279_v2  ;;  %v411_v6 = vmax.f32 %v409_v0, %v410_v3 }
 0x1af   :  { %961 = vpow2.f32 %v280_v4  ;;  %v412_v7 = vsub.f32 %v266_v52, %v411_v6  ;;  %v413_v8 = vsub.f32 %v267_v49, %v411_v6 }
 0x1b0   :  { %963 = vpow2.f32 %v282_v5 }
 0x1b1   :  { %v414_v9 = vmul.f32 1.442695, %v412_v7  ;;  %v416_v10 = vmul.f32 1.442695, %v413_v8 }
 0x1b3   :  { %965 = vpow2.f32 %v414_v9 }
 0x1b4   :  { %967 = vpow2.f32 %v416_v10 }
 0x1bc   :  { %v962_v11 = vpop.eup %961 }
 0x1bd   :  { %v964_v14 = vpop.eup %963  ;;  %v284_v15 = vsel %vm268_vm5, %v962_v11, 0.0 }
 0x1be   :  { %v285_v16 = vsel %vm268_vm5, %v964_v14, 0.0 }
 0x1bf   :  { %v286_v17 = vadd.f32 %v285_v16, %v284_v15  ;;  %v732_v15 = vld [vmem:[%s1215_s2] sm:$0xff] }
 0x1c0   :  { %v966_v18 = vpop.eup %965 }
 0x1c1   :  { %v968_v19 = vpop.eup %967  ;;  %v287_v20 = vrot.slane %v286_v17, 4  ;;  %v418_v21 = vsel %vm268_vm5, %v966_v18, 0.0 }
 0x1c2   :  { %v419_v22 = vsel %vm268_vm5, %v968_v19, 0.0 }
 0x1c3   :  { %v420_v24 = vadd.f32 %v419_v22, %v418_v21  ;;  %v288_v26 = vadd.f32 %v287_v20, %v286_v17 }
 0x1c5   :  { %v421_v27 = vrot.slane %v420_v24, 4  ;;  %v289_v28 = vrot.slane %v288_v26, 2 }
 0x1c7   :  { %v290_v29 = vadd.f32 %v289_v28, %v288_v26  ;;  %v422_v30 = vadd.f32 %v421_v27, %v420_v24 }
 0x1c9   :  { %v291_v31 = vrot.slane %v290_v29, 1  ;;  %v423_v32 = vrot.slane %v422_v30, 2 }
 0x1cb   :  { %v292_v35 = vadd.f32 %v291_v31, %v290_v29  ;;  %v424_v36 = vadd.f32 %v423_v32, %v422_v30 }
 0x1cd   :  { %969 = vrcp.f32 %v292_v35  ;;  %v425_v37 = vrot.slane %v424_v36, 1 }
 0x1cf   :  { %v426_v38 = vadd.f32 %v425_v37, %v424_v36 }
 0x1d1   :  { %971 = vrcp.f32 %v426_v38 }
 0x1da   :  { %v970_v39 = vpop.eup %969 }
 0x1db   :  { %v294_v40 = vmul.f32 %v970_v39, %v962_v11  ;;  %v295_v42 = vmul.f32 %v970_v39, %v964_v14  ;;  %v733_v11 = vld [vmem:[%s1215_s2 + $0x8] sm:$0xff] }
 0x1dd   :  { %296 = vxpose.xlu0.b32.start [1/2] (short) (narrow) %v294_v40, 8 }
 0x1de   :  { %v972_v41 = vpop.eup %971 }
 0x1df   :  { %v428_v43 = vmul.f32 %v972_v41, %v966_v18  ;;  %v429_v44 = vmul.f32 %v972_v41, %v968_v19 }
 0x1e1   :  { %297 = vxpose.xlu0.b32.end [2/2] (short) (narrow) %v295_v42, 8  ;;  %430 = vxpose.xlu1.b32.start [1/2] (short) (narrow) %v428_v43, 8 }
 0x1e5   :  { %431 = vxpose.xlu1.b32.end [2/2] (short) (narrow) %v429_v44, 8 }
 0x259   :  { %v312_v49 = vpop.trf.xlu0 }
 0x25a   :  { %921 = vmatmul.mubr.msk.f32.vlgmr.msra.gmra.mxu1 %vm328_vm8, %v312_v49 }
 0x25b   :  { %924 = vmatpush3.msra.mxu1 %v1120_v34  ;;  %927 = vmatprep.mubr.msk.f32.mxu1 %vm982_vm2, %v981_v13 }
 0x25c   :  { %925 = vmatprep.subr.mxu1 %v981_v13 }
 0x25d   :  { %926 = vmatpush3.msra.mxu1 %v1118_v33  ;;  %v446_v51 = vpop.trf.xlu1  ;;  %v705_v33 = vld [vmem:[%s1214_s4 + $0x8] sm:$0xff] }
 0x25e   :  { %949 = vmatprep.subr.msk.mxu1 %vm155_vm1, %v1076_v12  ;;  %928 = vmatmul.mubr.msk.f32.vlgmr.msra.gmra.mxu1 %vm328_vm8, %v446_v51  ;;  %vm707_vm9 = vcmp.gt.f32.partialorder %v705_v33, 0.0 }
 0x25f   :  { %950 = vmatpush3.xpose.msk.msra.mxu1 %vm155_vm1, %v1076_v12  ;;  %951 = vmatprep.mubr.msk.f32.mxu1 %vm155_vm1, %v615_v50 }
 0x260   :  { %954 = vmatprep.subr.mxu1 %v1076_v12 }
 0x262   :  { %952 = vmatmul.mubr.msk.f32.vlgmr.msra.gmra.mxu1 %vm155_vm1, %v620_v23 }
 0x263   :  { %955 = vmatpush3.msra.mxu1 %v1076_v12  ;;  %v704_v12 = vld [vmem:[%s1214_s4] sm:$0xff] }
 0x264   :  { %vm706_vm10 = vcmp.gt.f32.partialorder %v704_v12, 0.0 }
 0x31a   :  { %v398_v13 = vpop.f32.mrf.mxu1 }
 0x31b   :  { %402 = vst.msk [vmem:[%s1213_s8] sm:$0xff] %vm155_vm1, %v398_v13 }
 0x31c   :  { %v922_v25 = vpop.f32.mrf.mxu1 }
 0x31e   :  { %v531_v34 = vpop.f32.mrf.mxu1 }
 0x31f   :  { %535 = vst.msk [vmem:[%s1213_s8 + $0x8] sm:$0xff] %vm155_vm1, %v531_v34 }
 0x320   :  { %v929_v52 = vpop.f32.mrf.mxu1 }
 0x322   :  { %v953_v53 = vpop.f32.mrf.mxu1 }
 0x323   :  { %v709_v54 = vsel %vm707_vm9, %v953_v53, -10000.0 }
 0x324   :  { %v695_v55 = vpop.f32.mrf.mxu1  ;;  %v713_v56 = vsel %vm268_vm5, %v709_v54, -inf }
 0x325   :  { %v708_v57 = vsel %vm706_vm10, %v695_v55, -10000.0  ;;  %714 = vmax.xlane.f32.xlu1 %v713_v56 }
 0x326   :  { %v710_v58 = vsel %vm268_vm5, %v708_v57, -inf }
 0x327   :  { %711 = vmax.xlane.f32.xlu0 %v710_v58 }
 0x3ae   :  { %v715_v59 = vpop.xlane.xlu1 %714 }
 0x3af   :  { %v717_v60 = vsub.f32 %v709_v54, %v715_v59 }
 0x3b0   :  { %v712_v61 = vpop.xlane.xlu0 %711 }
 0x3b1   :  { %v716_v62 = vsub.f32 %v708_v57, %v712_v61  ;;  %v720_v63 = vmul.f32 1.442695, %v717_v60 }
 0x3b3   :  { %v718_v0 = vmul.f32 1.442695, %v716_v62 }
 0x3b5   :  { %973 = vpow2.f32 %v718_v0 }
 0x3b6   :  { %975 = vpow2.f32 %v720_v63 }
 0x3c2   :  { %v974_v1 = vpop.eup %973 }
 0x3c3   :  { %v722_v2 = vsel %vm268_vm5, %v974_v1, 0.0  ;;  %v976_v3 = vpop.eup %975 }
 0x3c4   :  { %723 = vadd.xlane.f32.xlu1 %v722_v2  ;;  %v725_v4 = vsel %vm268_vm5, %v976_v3, 0.0 }
 0x3c8   :  { %726 = vadd.xlane.f32.xlu1 %v725_v4 }
 0x44d   :  { %v724_v5 = vpop.xlane.xlu1 %723 }
 0x44e   :  { %977 = vrcp.f32 %v724_v5 }
 0x451   :  { %v727_v6 = vpop.xlane.xlu1 %726 }
 0x452   :  { %979 = vrcp.f32 %v727_v6 }
 0x45b   :  { %v978_v7 = vpop.eup %977 }
 0x45c   :  { %v730_v8 = vmul.f32 %v978_v7, %v974_v1 }
 0x45e   :  { %956 = vmatprep.mubr.msk.f32.mxu1 %vm268_vm5, %v730_v8 }
 0x45f   :  { %v980_v9 = vpop.eup %979 }
 0x460   :  { %v731_v10 = vmul.f32 %v980_v9, %v976_v3 }
 0x462   :  { %957 = vmatmul.mubr.msk.f32.vlgmr.msra.gmra.mxu1 %vm268_vm5, %v731_v10 }
 0x522   :  { %v958_v14 = vpop.f32.mrf.mxu1 }
 0x523   :  { %v816_v16 = vadd.f32 %v958_v14, %v733_v11 }
 0x524   :  { %v806_v17 = vpop.f32.mrf.mxu1 }
 0x525   :  { %v818_v18 = vmax.f32 %v816_v16, 0.0  ;;  %v815_v19 = vadd.f32 %v806_v17, %v732_v15 }
 0x527   :  { %820 = vst.msk [vmem:[%s1216_s9 + $0x8] sm:$0xff] %vm155_vm1, %v818_v18  ;;  %v817_v20 = vmax.f32 %v815_v19, 0.0 }
 0x529   :  { %819 = vst.msk [vmem:[%s1216_s9] sm:$0xff] %vm155_vm1, %v817_v20 }

// kernel: run.5
= control target key start
LH: loop header
LB: loop body
LE: loop exit
PB: predicated region body
PF: predicated region fallthrough
CT: control target
= control target key end

     0   :  { %vm51_vm0 = vcmask 523264   ;;  %vm133_vm1 = vcmask 261120   ;;  %v950_v11 = vmov 0.0   ;;  %v47_v12 = vlaneseq  ;;  %s1134_s5 = inlined_call_operand.vmem [shape: f32[96,32], index: 5, kind: input, shape index: {}]   ;;  %s1135_s0 = inlined_call_operand.vmem [shape: f32[16,64], index: 0, kind: input, shape index: {}]   ;;  %s1136_s3 = inlined_call_operand.vmem [shape: f32[8,32], index: 3, kind: input, shape index: {}]   ;;  %s1137_s6 = inlined_call_operand.vmem [shape: f32[2,32], index: 6, kind: input, shape index: {}]   ;;  %s1138_s1 = inlined_call_operand.vmem [shape: f32[16,8], index: 1, kind: input, shape index: {}]   ;;  %s1139_s2 = inlined_call_operand.vmem [shape: f32[16,32], index: 2, kind: input, shape index: {}]   ;;  %s1140_s4 = inlined_call_operand.vmem [shape: f32[8,32], index: 4, kind: input, shape index: {}]   ;;  %s1141_s7 = inlined_call_operand.vmem [shape: f32[1,8], index: 7, kind: input, shape index: {}]   ;;  %s1142_s8 = inlined_call_operand.vmem [shape: f32[2,8], index: 8, kind: output, shape index: {}]  }
   0x1   :  { %v38_v0 = vld [vmem:[%s1134_s5 + $0x38] sm:$0xff]  ;;  %v37_v1 = vld [vmem:[%s1134_s5 + $0x30] sm:$0xff]  ;;  %v36_v2 = vld [vmem:[%s1134_s5 + $0x28] sm:$0xff]  ;;  %vm951_vm2 = vmmov 0   ;;  %vm229_vm4 = vcmask 64512   ;;  %vm525_vm7 = vcmask 57344  }
   0x2   :  { %866 = vmatprep.subr.mxu0 %v38_v0  ;;  %v45_v3 = vld [vmem:[%s1135_s0] sm:$0xff]  ;;  %v34_v5 = vld [vmem:[%s1134_s5 + $0x18] sm:$0xff]  ;;  %v33_v6 = vld [vmem:[%s1134_s5 + $0x10] sm:$0xff]  ;;  %v1037_v13 = vshrl.u32 %v47_v12, 7 }
   0x3   :  { %867 = vmatpush3.msra.mxu0 %v38_v0  ;;  %882 = vmatprep.mubr.msk.f32.mxu0 %vm51_vm0, %v45_v3  ;;  %v35_v4 = vld [vmem:[%s1134_s5 + $0x20] sm:$0xff]  ;;  %v32_v7 = vld [vmem:[%s1134_s5 + $0x8] sm:$0xff]  ;;  %v41_v3 = vld [vmem:[%s1134_s5 + $0x50] sm:$0xff] }
   0x4   :  { %868 = vmatprep.subr.mxu0 %v37_v1  ;;  %v31_v8 = vld [vmem:[%s1134_s5] sm:$0xff]  ;;  %v46_v9 = vld [vmem:[%s1135_s0 + $0x8] sm:$0xff]  ;;  %v49_v14 = vsub.s32 0, %v1037_v13 }
   0x5   :  { %869 = vmatpush3.msra.mxu0 %v37_v1  ;;  %v29_v10 = vld [vmem:[%s1136_s3] sm:$0xff]  ;;  %v219_v21 = vld [vmem:[%s1138_s1 + $0x8] sm:$0xff]  ;;  %v42_v1 = vld [vmem:[%s1134_s5 + $0x58] sm:$0xff] }
   0x6   :  { %870 = vmatprep.subr.mxu0 %v36_v2  ;;  %885 = vmatprep.subr.msk.mxu1 %vm133_vm1, %v29_v10  ;;  %v1043_v15 = vld [vmem:[%s1137_s6] sm:$0x3]  ;;  %vm221_vm3 = vcmp.gt.f32.partialorder %v219_v21, 0.0 }
   0x7   :  { %871 = vmatpush3.msra.mxu0 %v36_v2  ;;  %886 = vmatpush3.xpose.msk.msra.mxu1 %vm133_vm1, %v29_v10  ;;  %v50_v16 = vrot.slane %v1043_v15, %v49_v14  ;;  %v218_v22 = vld [vmem:[%s1138_s1] sm:$0xff] }
   0x8   :  { %872 = vmatprep.subr.mxu0 %v35_v4  ;;  %890 = vmatprep.subr.mxu1 %v950_v11  ;;  %vm220_vm5 = vcmp.gt.f32.partialorder %v218_v22, 0.0  ;;  %v30_v14 = vld [vmem:[%s1140_s4] sm:$0xff] }
   0x9   :  { %873 = vmatpush3.msra.mxu0 %v35_v4  ;;  %v40_v4 = vld [vmem:[%s1134_s5 + $0x48] sm:$0xff] }
   0xa   :  { %874 = vmatprep.subr.mxu0 %v34_v5 }
   0xb   :  { %875 = vmatpush3.msra.mxu0 %v34_v5  ;;  %v39_v5 = vld [vmem:[%s1134_s5 + $0x40] sm:$0xff] }
   0xc   :  { %876 = vmatprep.subr.mxu0 %v33_v6 }
   0xd   :  { %877 = vmatpush3.msra.mxu0 %v33_v6  ;;  %v354_v6 = vld [vmem:[%s1139_s2] sm:$0xff] }
   0xe   :  { %878 = vmatprep.subr.mxu0 %v32_v7 }
   0xf   :  { %879 = vmatpush3.msra.mxu0 %v32_v7 }
  0x10   :  { %880 = vmatprep.subr.mxu0 %v31_v8 }
  0x11   :  { %881 = vmatpush3.msra.mxu0 %v31_v8 }
  0x12   :  { %883 = vmatmul.mubr.msk.f32.vlgmr.msra.gmra.mxu0 %vm51_vm0, %v46_v9  ;;  %906 = vmatprep.subr.mxu0 %v950_v11 }
  0x13   :  { %908 = vmatprep.mubr.msk.f32.mxu0 %vm951_vm2, %v950_v11  ;;  %907 = vmatpush3.xpose.msk.msra.mxu0 %vm133_vm1, %v30_v14 }
  0x14   :  { %916 = vmatprep.subr.mxu0 %v950_v11 }
  0xd2   :  { %v884_v17 = vpop.f32.mrf.mxu0 }
  0xd3   :  { %v1046_v20 = vadd.f32 %v884_v17, %v50_v16 }
  0xd4   :  { %v124_v18 = vpop.f32.mrf.mxu0 }
  0xd5   :  { %v125_v19 = vadd.f32 %v124_v18, %v50_v16  ;;  %v358_v16 = vsub.s32 1, %v1037_v13 }
  0xd7   :  { %887 = vmatprep.mubr.msk.f32.mxu1 %vm133_vm1, %v125_v19  ;;  %v359_v17 = vrot.slane %v1043_v15, %v358_v16 }
  0xd8   :  { %888 = vmatmul.mubr.msk.f32.vlgmr.msra.gmra.mxu1 %vm133_vm1, %v1046_v20 }
  0xd9   :  { %891 = vmatpush3.msra.mxu1 %v125_v19  ;;  %892 = vmatprep.mubr.msk.f32.mxu1 %vm951_vm2, %v950_v11 }
  0xda   :  { %895 = vmatprep.subr.mxu1 %v950_v11 }
 0x198   :  { %v889_v23 = vpop.f32.mrf.mxu1 }
 0x199   :  { %v223_v24 = vsel %vm221_vm3, %v889_v23, -10000.0  ;;  %v651_v23 = vld [vmem:[%s1139_s2 + $0x8] sm:$0xff] }
 0x19a   :  { %v527_v25 = vsel %vm229_vm4, %v223_v24, -inf  ;;  %v209_v26 = vpop.f32.mrf.mxu1 }
 0x19b   :  { %v528_v27 = vrot.slane %v527_v25, 4  ;;  %v222_v28 = vsel %vm220_vm5, %v209_v26, -10000.0 }
 0x19c   :  { %v230_v29 = vsel %vm229_vm4, %v222_v28, -inf }
 0x19d   :  { %v529_v30 = vmax.f32 %v527_v25, %v528_v27  ;;  %v231_v31 = vrot.slane %v230_v29, 4  ;;  %v227_v25 = vand.u32 127, %v47_v12  ;;  %v44_v12 = vld [vmem:[%s1141_s7] sm:$0x1] }
 0x19f   :  { %v530_v32 = vrot.slane %v529_v30, 2  ;;  %v232_v33 = vmax.f32 %v230_v29, %v231_v31  ;;  %vm228_vm6 = vcmp.eq.s32.totalorder %v1037_v13, %v227_v25 }
 0x1a1   :  { %v531_v34 = vmax.f32 %v529_v30, %v530_v32  ;;  %v233_v35 = vrot.slane %v232_v33, 2 }
 0x1a3   :  { %v532_v36 = vrot.slane %v531_v34, 1  ;;  %v234_v37 = vmax.f32 %v232_v33, %v233_v35 }
 0x1a5   :  { %v533_v38 = vmax.f32 %v531_v34, %v532_v36  ;;  %v235_v39 = vrot.slane %v234_v37, 1 }
 0x1a7   :  { %v534_v40 = vsub.f32 %v223_v24, %v533_v38  ;;  %v236_v41 = vmax.f32 %v234_v37, %v235_v39 }
 0x1a9   :  { %v535_v42 = vmul.f32 1.442695, %v534_v40  ;;  %v237_v43 = vsub.f32 %v222_v28, %v236_v41 }
 0x1ab   :  { %934 = vpow2.f32 %v535_v42  ;;  %v238_v44 = vmul.f32 1.442695, %v237_v43 }
 0x1ad   :  { %936 = vpow2.f32 %v238_v44 }
 0x1b8   :  { %v935_v45 = vpop.eup %934 }
 0x1b9   :  { %v537_v46 = vsel %vm229_vm4, %v935_v45, 0.0 }
 0x1ba   :  { %v937_v47 = vpop.eup %936  ;;  %v538_v48 = vrot.slane %v537_v46, 4 }
 0x1bb   :  { %v240_v49 = vsel %vm229_vm4, %v937_v47, 0.0 }
 0x1bc   :  { %v539_v50 = vadd.f32 %v538_v48, %v537_v46  ;;  %v241_v51 = vrot.slane %v240_v49, 4 }
 0x1be   :  { %v540_v52 = vrot.slane %v539_v50, 2  ;;  %v242_v53 = vadd.f32 %v241_v51, %v240_v49 }
 0x1c0   :  { %v243_v54 = vrot.slane %v242_v53, 2  ;;  %v541_v55 = vadd.f32 %v540_v52, %v539_v50 }
 0x1c2   :  { %v244_v56 = vadd.f32 %v243_v54, %v242_v53  ;;  %v542_v57 = vrot.slane %v541_v55, 1 }
 0x1c4   :  { %v245_v58 = vrot.slane %v244_v56, 1  ;;  %v543_v60 = vadd.f32 %v542_v57, %v541_v55 }
 0x1c6   :  { %v246_v59 = vadd.f32 %v245_v58, %v244_v56 }
 0x1c8   :  { %938 = vrcp.f32 %v246_v59 }
 0x1c9   :  { %940 = vrcp.f32 %v543_v60 }
 0x1d5   :  { %v939_v61 = vpop.eup %938 }
 0x1d6   :  { %v248_v62 = vmul.f32 %v939_v61, %v937_v47  ;;  %v941_v63 = vpop.eup %940 }
 0x1d7   :  { %v545_v0 = vmul.f32 %v941_v63, %v935_v45 }
 0x1d8   :  { %249 = vxpose.xlu0.b32.start.end [1/1] (short) (narrow) %v248_v62, 8 }
 0x1dc   :  { %546 = vxpose.xlu0.b32.start.end [1/1] (short) (narrow) %v545_v0, 8 }
 0x254   :  { %v265_v2 = vpop.trf.xlu0 }
 0x255   :  { %893 = vmatmul.mubr.msk.f32.vlgmr.msra.gmra.mxu1 %vm229_vm4, %v265_v2 }
 0x256   :  { %896 = vmatpush3.msra.mxu1 %v42_v1  ;;  %903 = vmatprep.mubr.msk.f32.mxu1 %vm951_vm2, %v950_v11 }
 0x257   :  { %897 = vmatprep.subr.mxu1 %v950_v11 }
 0x258   :  { %898 = vmatpush3.msra.mxu1 %v41_v3  ;;  %v562_v10 = vpop.trf.xlu0 }
 0x259   :  { %899 = vmatprep.subr.mxu1 %v950_v11 }
 0x25a   :  { %900 = vmatpush3.msra.mxu1 %v40_v4 }
 0x25b   :  { %901 = vmatprep.subr.mxu1 %v950_v11 }
 0x25c   :  { %902 = vmatpush3.msra.mxu1 %v39_v5 }
 0x25d   :  { %911 = vmatprep.subr.mxu1 %v950_v11 }
 0x315   :  { %v350_v7 = vpop.f32.mrf.mxu1 }
 0x316   :  { %v355_v8 = vmax.f32 %v354_v6, %v350_v7 }
 0x317   :  { %v894_v9 = vpop.f32.mrf.mxu1 }
 0x318   :  { %904 = vmatmul.mubr.msk.f32.vlgmr.msra.gmra.mxu1 %vm133_vm1, %v355_v8 }
 0x319   :  { %912 = vmatpush3.msra.mxu1 %v1046_v20  ;;  %913 = vmatprep.mubr.msk.f32.mxu1 %vm951_vm2, %v950_v11 }
 0x31a   :  { %927 = vmatprep.subr.mxu1 %v950_v11 }
 0x31c   :  { %914 = vmatmul.mubr.msk.f32.vlgmr.msra.gmra.mxu1 %vm229_vm4, %v562_v10 }
 0x31d   :  { %929 = vmatprep.mubr.msk.f32.mxu1 %vm951_vm2, %v950_v11  ;;  %928 = vmatpush3.xpose.msk.msra.mxu1 %vm133_vm1, %v30_v14 }
 0x3d8   :  { %v429_v18 = vpop.f32.mrf.mxu1 }
 0x3d9   :  { %v430_v19 = vadd.f32 %v429_v18, %v359_v17 }
 0x3da   :  { %v905_v20 = vpop.f32.mrf.mxu1 }
 0x3db   :  { %v433_v21 = vmax.f32 %v430_v19, 0.0 }
 0x3dc   :  { %v647_v22 = vpop.f32.mrf.mxu1 }
 0x3dd   :  { %909 = vmatmul.mubr.msk.f32.vlgmr.msra.gmra.mxu0 %vm133_vm1, %v433_v21  ;;  %v652_v15 = vmax.f32 %v651_v23, %v647_v22 }
 0x3de   :  { %917 = vmatpush3.msra.mxu0 %v42_v1  ;;  %v915_v24 = vpop.f32.mrf.mxu1  ;;  %924 = vmatprep.mubr.msk.f32.mxu0 %vm951_vm2, %v950_v11 }
 0x3df   :  { %918 = vmatprep.subr.mxu0 %v950_v11 }
 0x3e0   :  { %919 = vmatpush3.msra.mxu0 %v41_v3 }
 0x3e1   :  { %920 = vmatprep.subr.mxu0 %v950_v11 }
 0x3e2   :  { %921 = vmatpush3.msra.mxu0 %v40_v4 }
 0x3e3   :  { %922 = vmatprep.subr.mxu0 %v950_v11 }
 0x3e4   :  { %923 = vmatpush3.msra.mxu0 %v39_v5 }
 0x3e5   :  { %925 = vmatmul.mubr.msk.f32.vlgmr.msra.gmra.mxu0 %vm133_vm1, %v652_v15 }
 0x49d   :  { %v506_v26 = vpop.f32.mrf.mxu0 }
 0x49e   :  { %v510_v27 = vsel %vm228_vm6, %v506_v26, 0.0 }
 0x49f   :  { %v511_v28 = vsel %vm229_vm4, %v510_v27, 0.0  ;;  %v910_v29 = vpop.f32.mrf.mxu0 }
 0x4a0   :  { %v512_v30 = vrot.slane %v511_v28, 4 }
 0x4a2   :  { %v513_v31 = vadd.f32 %v512_v30, %v511_v28 }
 0x4a4   :  { %v514_v32 = vrot.slane %v513_v31, 2 }
 0x4a5   :  { %v722_v33 = vpop.f32.mrf.mxu0 }
 0x4a6   :  { %v515_v34 = vadd.f32 %v514_v32, %v513_v31  ;;  %v723_v11 = vadd.f32 %v722_v33, %v359_v17 }
 0x4a7   :  { %v926_v35 = vpop.f32.mrf.mxu0 }
 0x4a8   :  { %v516_v36 = vrot.slane %v515_v34, 1  ;;  %v726_v37 = vmax.f32 %v723_v11, 0.0 }
 0x4aa   :  { %v517_v38 = vadd.f32 %v516_v36, %v515_v34  ;;  %930 = vmatmul.mubr.msk.f32.vlgmr.msra.gmra.mxu1 %vm133_vm1, %v726_v37 }
 0x4ac   :  { %v518_v39 = vadd.f32 %v517_v38, %v44_v12 }
 0x4ae   :  { %v829_v40 = vmul.f32 -1.442695, %v518_v39 }
 0x4b0   :  { %942 = vpow2.f32 %v829_v40 }
 0x4bd   :  { %v943_v41 = vpop.eup %942 }
 0x4be   :  { %v522_v42 = vadd.f32 1.0, %v943_v41 }
 0x4c0   :  { %944 = vrcp.f32 %v522_v42 }
 0x4cd   :  { %v945_v43 = vpop.eup %944 }
 0x4ce   :  { %526 = vst.msk [vmem:[%s1142_s8] sm:$0x1] %vm525_vm7, %v945_v43 }
 0x56a   :  { %v796_v44 = vpop.f32.mrf.mxu1 }
 0x56b   :  { %v800_v45 = vsel %vm228_vm6, %v796_v44, 0.0 }
 0x56c   :  { %v801_v46 = vsel %vm229_vm4, %v800_v45, 0.0  ;;  %v931_v47 = vpop.f32.mrf.mxu1 }
 0x56d   :  { %v802_v48 = vrot.slane %v801_v46, 4 }
 0x56f   :  { %v803_v49 = vadd.f32 %v802_v48, %v801_v46 }
 0x571   :  { %v804_v50 = vrot.slane %v803_v49, 2 }
 0x573   :  { %v805_v51 = vadd.f32 %v804_v50, %v803_v49 }
 0x575   :  { %v806_v52 = vrot.slane %v805_v51, 1 }
 0x577   :  { %v807_v53 = vadd.f32 %v806_v52, %v805_v51 }
 0x579   :  { %v808_v54 = vadd.f32 %v807_v53, %v44_v12 }
 0x57b   :  { %v834_v55 = vmul.f32 -1.442695, %v808_v54 }
 0x57d   :  { %946 = vpow2.f32 %v834_v55 }
 0x58a   :  { %v947_v56 = vpop.eup %946 }
 0x58b   :  { %v812_v57 = vadd.f32 1.0, %v947_v56 }
 0x58d   :  { %948 = vrcp.f32 %v812_v57 }
 0x59a   :  { %v949_v58 = vpop.eup %948 }
 0x59b   :  { %815 = vst.msk [vmem:[%s1142_s8 + $0x1] sm:$0x1] %vm525_vm7, %v949_v58 }

</bundles_post_ra>
